<compile_context>
chip_gen: v6e
topology: v6e:2x2x1
jax: 0.10.0
libtpu: 0.0.40
codegen_flags: <defaults>
</compile_context>

<pallas_src>
import numpy as np
import jax
import jax.numpy as jnp
from jax.experimental import pallas as pl
from jax.experimental.pallas import tpu as pltpu


def _round_up(n, m):
    return ((n + m - 1) // m) * m


# ---------------------------------------------------------------------------
# Fused kernel: all experts' MLPs + SparseDispatcher.combine in one grid step.
# ---------------------------------------------------------------------------
def _make_expert_kernel(E, Hp, Op, G):
    n_groups = (E + G - 1) // G

    def kernel(x_ref, gates_ref, w1_ref, b1_ref, w2_ref, b2_ref, y_ref):
        x = x_ref[...]                                  # (TB, D) bf16
        gates = gates_ref[...]                          # (TB, E) f32, resident load
        acc = jnp.zeros(y_ref.shape, jnp.float32)       # (TB, Op) register accumulator

        # Static unrolled loop over expert groups; each group fuses G experts' first
        # layer into one MXU push so the f32 hidden intermediate is (TB, G*Hp), not
        # (TB, E*Hp) (bounds VMEM on v7x while keeping N lane-dense).
        for g in range(n_groups):
            e0 = g * G
            e1 = min(E, e0 + G)
            w1g = w1_ref[:, e0 * Hp:e1 * Hp]            # bf16, lane-aligned static slice
            h = jnp.dot(x, w1g, preferred_element_type=jnp.float32)
            h = h + b1_ref[:, e0 * Hp:e1 * Hp]          # f32 bias
            h = jnp.maximum(h, 0.0)                     # ReLU in f32

            for j in range(e1 - e0):
                e = e0 + j
                he = h[:, j * Hp:(j + 1) * Hp].astype(jnp.bfloat16)
                z = jnp.dot(he, w2_ref[e], preferred_element_type=jnp.float32) + b2_ref[e]
                # MLP's Softmax(dim=1); padded output columns carry a -1e30 f32 bias so
                # they contribute exactly 0.  One reciprocal per row instead of Op
                # divides per row (EUP relief).
                m = jnp.max(z, axis=1, keepdims=True)
                p = jnp.exp(z - m)
                inv = pl.reciprocal(jnp.sum(p, axis=1, keepdims=True))
                sm = p * inv
                g_col = gates[:, e:e + 1]               # (TB, 1) static gate-column slice
                # SparseDispatcher.combine: sum_e gate[b,e] * exp(expert_e(x_b))
                acc = acc + g_col * jnp.exp(sm)

        eps = jnp.float32(np.finfo(float).eps)
        acc = jnp.where(acc == 0.0, eps, acc)
        y_ref[...] = jnp.log(acc)

    return kernel


# ---------------------------------------------------------------------------
# One-time weight preparation (hoisted out of the per-forward path)
# ---------------------------------------------------------------------------
def prepare_moe_params(params, lane=128):
    """Pad / fuse / cast the expert weights once.  `lane` is the feature-axis padding
    multiple; 128 is safe everywhere.  At production H/O on v6e/v7x pass lane=256 so
    the 256x256 MXU runs full width (keep 128 on v5e)."""
    W1, b1, W2, b2 = params["W1"], params["b1"], params["W2"], params["b2"]
    E, D, H = W1.shape
    O = W2.shape[2]
    Hp = max(lane, _round_up(H, lane))
    Op = max(lane, _round_up(O, lane))

    f32, bf16 = jnp.float32, jnp.bfloat16
    # Fused first-layer weights: (D, E*Hp) bf16, bias (1, E*Hp) f32.
    W1p = jnp.pad(W1.astype(f32), ((0, 0), (0, 0), (0, Hp - H)))          # (E, D, Hp)
    W1f = jnp.transpose(W1p, (1, 0, 2)).reshape(D, E * Hp).astype(bf16)
    b1f = jnp.pad(b1.astype(f32), ((0, 0), (0, Hp - H))).reshape(1, E * Hp)

    # Per-expert second-layer weights bf16; padded output columns get a very negative
    # f32 bias so the in-kernel softmax ignores them (bias stays f32 deliberately).
    W2p = jnp.pad(W2.astype(f32), ((0, 0), (0, Hp - H), (0, Op - O))).astype(bf16)
    b2pad = jnp.pad(b2.astype(f32), ((0, 0), (0, Op - O)))
    col_valid = (jnp.arange(Op) < O)[None, :]
    b2p = jnp.where(col_valid, b2pad, jnp.full_like(b2pad, -1e30)).reshape(E, 1, Op)

    return {"w_gate": params["w_gate"].astype(f32),
            "W1f": W1f, "b1f": b1f, "W2p": W2p, "b2p": b2p,
            "E": E, "D": D, "H": H, "O": O, "Hp": Hp, "Op": Op}


def expert_combine(x, gates, prep):
    B, D = x.shape
    E, Hp, Op, O = prep["E"], prep["Hp"], prep["Op"], prep["O"]

    # Batch tiling: pad to a sublane/tile multiple; cap TB at 128 so the "parallel"
    # batch grid has >=2 steps whenever B is large (v7x two-TensorCore sharding) and
    # per-step VMEM does not scale with full B.
    TB = 128 if B > 128 else _round_up(B, 8)
    Bp = _round_up(B, TB)
    if Bp != B:
        x = jnp.pad(x, ((0, Bp - B), (0, 0)))
        gates = jnp.pad(gates, ((0, Bp - B), (0, 0)))
    grid = (Bp // TB,)

    # Expert-group size: keep the f32 (TB, G*Hp) hidden intermediate near 4 MiB.
    G = max(1, min(E, (4 << 20) // (TB * Hp * 4)))
    kernel = _make_expert_kernel(E, Hp, Op, G)

    x_bf = x.astype(jnp.bfloat16)
    gates_f32 = gates.astype(jnp.float32)

    def run(single_buffer_weights):
        wkw = {"pipeline_mode": pl.Buffered(1)} if single_buffer_weights else {}
        wbuf = 1 if single_buffer_weights else 2
        in_specs = [
            pl.BlockSpec((TB, D), lambda i: (i, 0)),                # x (batch tile)
            pl.BlockSpec((TB, E), lambda i: (i, 0)),                # gates (batch tile)
            pl.BlockSpec((D, E * Hp), lambda i: (0, 0), **wkw),     # fused W1 (resident)
            pl.BlockSpec((1, E * Hp), lambda i: (0, 0), **wkw),     # fused b1 (resident)
            pl.BlockSpec((E, Hp, Op), lambda i: (0, 0, 0), **wkw),  # W2 (resident)
            pl.BlockSpec((E, 1, Op), lambda i: (0, 0, 0), **wkw),   # b2 (resident)
        ]
        # Explicit scoped-VMEM budget: resident weights + double-buffered I/O tiles +
        # hidden chunk, with 2x + 8 MiB headroom, capped at 64 MiB (v7x physical).
        wt_bytes = (D * E * Hp) * 2 + (E * Hp) * 4 + (E * Hp * Op) * 2 + (E * Op) * 4
        io_bytes = 2 * (TB * D * 2 + TB * E * 4 + TB * Op * 4)
        h_bytes = TB * G * Hp * 4
        vmem_limit = int(min(64 << 20, 2 * (wbuf * wt_bytes + io_bytes + h_bytes) + (8 << 20)))

        return pl.pallas_call(
            kernel,
            out_shape=jax.ShapeDtypeStruct((Bp, Op), jnp.float32),
            grid=grid,
            in_specs=in_specs,
            out_specs=pl.BlockSpec((TB, Op), lambda i: (i, 0)),
            compiler_params=pltpu.CompilerParams(
                dimension_semantics=("parallel",),
                vmem_limit_bytes=vmem_limit),
        )(x_bf, gates_f32, prep["W1f"], prep["b1f"], prep["W2p"], prep["b2p"])

    try:
        y_pad = run(True)
    except Exception:
        # TODO(synk): some jax versions reject single-buffered resident BlockSpecs;
        # fall back to default double buffering.
        y_pad = run(False)

    return y_pad[:B, :O]


# ---------------------------------------------------------------------------
# Plain-JAX glue: gating logits, top-k, scatter, load-balancing loss
# ---------------------------------------------------------------------------
def cv_squared(v):
    eps = 1e-10
    if v.shape[0] == 1:
        return jnp.zeros((), v.dtype)
    v = v.astype(jnp.float32)
    return jnp.var(v, ddof=1) / (jnp.mean(v) ** 2 + eps)


def moe_forward(x, prep, k=4, loss_coef=1e-4):
    w_gate = prep["w_gate"]
    B = x.shape[0]
    E = w_gate.shape[1]

    # Gating in plain XLA (tiny matmul); eval path (no noise).
    logits = jnp.dot(x.astype(jnp.float32), w_gate)                 # [B, E]
    top_vals, top_idx = jax.lax.top_k(logits, min(k + 1, E))
    top_k_gates = jax.nn.softmax(top_vals[:, :k], axis=1)
    gates = jnp.zeros((B, E), jnp.float32).at[
        jnp.arange(B)[:, None], top_idx[:, :k]].set(top_k_gates)

    importance = gates.sum(0)
    load = (gates > 0).sum(0).astype(jnp.float32)
    loss = (cv_squared(importance) + cv_squared(load)) * loss_coef

    y = expert_combine(x, gates, prep)
    return y, loss


# ---------------------------------------------------------------------------
# Pure-JAX f32 reference (same math, no Pallas) for a sanity check
# ---------------------------------------------------------------------------
def _reference(x, params, k=4, loss_coef=1e-4):
    logits = x @ params["w_gate"]
    top_vals, top_idx = jax.lax.top_k(logits, min(k + 1, logits.shape[1]))
    tkg = jax.nn.softmax(top_vals[:, :k], axis=1)
    gates = jnp.zeros_like(logits).at[
        jnp.arange(x.shape[0])[:, None], top_idx[:, :k]].set(tkg)
    h = jnp.maximum(jnp.einsum("bd,edh->ebh", x, params["W1"]) + params["b1"][:, None, :], 0.0)
    z = jnp.einsum("ebh,eho->ebo", h, params["W2"]) + params["b2"][:, None, :]
    sm = jax.nn.softmax(z, axis=-1)
    combined = jnp.einsum("be,ebo->bo", gates, jnp.exp(sm))
    combined = jnp.where(combined == 0.0, np.finfo(float).eps, combined)
    y = jnp.log(combined)
    loss = (cv_squared(gates.sum(0)) + cv_squared((gates > 0).sum(0).astype(jnp.float32))) * loss_coef
    return y, loss


if __name__ == "__main__":
    B, D, H, O, E, K = 8, 32, 64, 32, 8, 4

    key = jax.random.PRNGKey(0)
    k1, k2, k3, k4, k5, kx = jax.random.split(key, 6)
    lim1 = 1.0 / np.sqrt(D)
    lim2 = 1.0 / np.sqrt(H)
    params = {
        # module __init__ zeros w_gate; use small deterministic random so gating is non-trivial
        "w_gate": 0.1 * jax.random.normal(k1, (D, E), jnp.float32),
        "W1": jax.random.uniform(k2, (E, D, H), jnp.float32, -lim1, lim1),
        "b1": jax.random.uniform(k3, (E, H), jnp.float32, -lim1, lim1),
        "W2": jax.random.uniform(k4, (E, H, O), jnp.float32, -lim2, lim2),
        "b2": jax.random.uniform(k5, (E, O), jnp.float32, -lim2, lim2),
    }
    x = jax.random.normal(kx, (B, D), jnp.float32)

    prep = prepare_moe_params(params)          # one-time weight re-layout / bf16 cast
    y, loss = moe_forward(x, prep, k=K)
    jax.block_until_ready((y, loss))

    y_ref, loss_ref = _reference(x, params, k=K)
    # y tolerance accounts for bf16 MXU operands (math/accumulation stays f32).
    np.testing.assert_allclose(np.asarray(y), np.asarray(y_ref), rtol=2e-2, atol=2e-2)
    np.testing.assert_allclose(np.asarray(loss), np.asarray(loss_ref), rtol=1e-5, atol=1e-7)

    print("KERNEL_OK")
</pallas_src>

<mosaic_0001>
module attributes {stable_mosaic.version = 11 : i64} {
  func.func @kernel(%arg0: i32, %arg1: memref<8x32xbf16, #tpu.memory_space<vmem>>, %arg2: memref<8x8xf32, #tpu.memory_space<vmem>>, %arg3: memref<32x1024xbf16, #tpu.memory_space<vmem>>, %arg4: memref<1x1024xf32, #tpu.memory_space<vmem>>, %arg5: memref<8x128x128xbf16, #tpu.memory_space<vmem>>, %arg6: memref<8x1x128xf32, #tpu.memory_space<vmem>>, %arg7: memref<8x128xf32, #tpu.memory_space<vmem>>) attributes {dimension_semantics = [#tpu.dimension_semantics<parallel>], iteration_bounds = array<i64: 1>, scalar_prefetch = 0 : i64, scratch_operands = 0 : i64, tpu.core_type = #tpu.core_type<tc>, window_params = [{transform_indices = @transform_0, window_bounds = array<i64: 8, 32>}, {transform_indices = @transform_1, window_bounds = array<i64: 8, 8>}, {pipeline_mode = #tpu.pipeline_mode<synchronous>, transform_indices = @transform_2, window_bounds = array<i64: 32, 1024>}, {pipeline_mode = #tpu.pipeline_mode<synchronous>, transform_indices = @transform_3, window_bounds = array<i64: 1, 1024>}, {pipeline_mode = #tpu.pipeline_mode<synchronous>, transform_indices = @transform_4, window_bounds = array<i64: 8, 128, 128>}, {pipeline_mode = #tpu.pipeline_mode<synchronous>, transform_indices = @transform_5, window_bounds = array<i64: 8, 1, 128>}, {transform_indices = @transform_6, window_bounds = array<i64: 8, 128>}]} {
    %c0 = arith.constant 0 : index
    %c0_0 = arith.constant 0 : index
    %0 = vector.load %arg1[%c0, %c0_0] : memref<8x32xbf16, #tpu.memory_space<vmem>>, vector<8x32xbf16>
    %c0_1 = arith.constant 0 : index
    %c0_2 = arith.constant 0 : index
    %1 = vector.load %arg2[%c0_1, %c0_2] : memref<8x8xf32, #tpu.memory_space<vmem>>, vector<8x8xf32>
    %cst = arith.constant 0.000000e+00 : f32
    %2 = vector.broadcast %cst : f32 to vector<8x128xf32>
    %c0_3 = arith.constant 0 : index
    %c0_4 = arith.constant 0 : index
    %3 = vector.load %arg3[%c0_3, %c0_4] : memref<32x1024xbf16, #tpu.memory_space<vmem>>, vector<32x1024xbf16>
    %cst_5 = arith.constant dense<0.000000e+00> : vector<8x1024xf32>
    %4 = tpu.matmul %0, %3, %cst_5 {dimension_numbers = #tpu.dot_dimension_numbers<[1], [0], [0], [1], [0, 0, 1, 1], [], []>} : vector<8x32xbf16>, vector<32x1024xbf16>, vector<8x1024xf32> -> vector<8x1024xf32>
    %c0_6 = arith.constant 0 : index
    %c0_7 = arith.constant 0 : index
    %5 = vector.load %arg4[%c0_6, %c0_7] : memref<1x1024xf32, #tpu.memory_space<vmem>>, vector<1x1024xf32>
    %6 = vector.broadcast %5 : vector<1x1024xf32> to vector<8x1024xf32>
    %7 = arith.addf %4, %6 : vector<8x1024xf32>
    %cst_8 = arith.constant 0.000000e+00 : f32
    %8 = vector.broadcast %cst_8 : f32 to vector<8x1024xf32>
    %9 = arith.maximumf %7, %8 : vector<8x1024xf32>
    %10 = vector.extract_strided_slice %9 {offsets = [0, 0], sizes = [8, 128], strides = [1, 1]} : vector<8x1024xf32> to vector<8x128xf32>
    %11 = arith.truncf %10 : vector<8x128xf32> to vector<8x128xbf16>
    %c0_9 = arith.constant 0 : index
    %c0_10 = arith.constant 0 : index
    %c0_11 = arith.constant 0 : index
    %12 = vector.load %arg5[%c0_9, %c0_10, %c0_11] : memref<8x128x128xbf16, #tpu.memory_space<vmem>>, vector<1x128x128xbf16>
    %13 = vector.shape_cast %12 : vector<1x128x128xbf16> to vector<128x128xbf16>
    %cst_12 = arith.constant dense<0.000000e+00> : vector<8x128xf32>
    %14 = tpu.matmul %11, %13, %cst_12 {dimension_numbers = #tpu.dot_dimension_numbers<[1], [0], [0], [1], [0, 0, 1, 1], [], []>} : vector<8x128xbf16>, vector<128x128xbf16>, vector<8x128xf32> -> vector<8x128xf32>
    %c0_13 = arith.constant 0 : index
    %c0_14 = arith.constant 0 : index
    %c0_15 = arith.constant 0 : index
    %15 = vector.load %arg6[%c0_13, %c0_14, %c0_15] : memref<8x1x128xf32, #tpu.memory_space<vmem>>, vector<1x1x128xf32>
    %16 = vector.shape_cast %15 : vector<1x1x128xf32> to vector<1x128xf32>
    %17 = vector.broadcast %16 : vector<1x128xf32> to vector<8x128xf32>
    %18 = arith.addf %14, %17 : vector<8x128xf32>
    %cst_16 = arith.constant dense<0xFF800000> : vector<8xf32>
    %19 = vector.multi_reduction <maximumf>, %18, %cst_16 [1] : vector<8x128xf32> to vector<8xf32>
    %20 = vector.shape_cast %19 : vector<8xf32> to vector<8x1xf32>
    %21 = vector.broadcast %20 : vector<8x1xf32> to vector<8x128xf32>
    %22 = arith.subf %18, %21 : vector<8x128xf32>
    %23 = math.exp %22 : vector<8x128xf32>
    %cst_17 = arith.constant dense<0.000000e+00> : vector<8xf32>
    %24 = vector.multi_reduction <add>, %23, %cst_17 [1] : vector<8x128xf32> to vector<8xf32>
    %25 = vector.shape_cast %24 : vector<8xf32> to vector<8x1xf32>
    %26 = tpu.reciprocal %25 : vector<8x1xf32> -> vector<8x1xf32>
    %27 = vector.broadcast %26 : vector<8x1xf32> to vector<8x128xf32>
    %28 = arith.mulf %23, %27 : vector<8x128xf32>
    %29 = vector.extract_strided_slice %1 {offsets = [0, 0], sizes = [8, 1], strides = [1, 1]} : vector<8x8xf32> to vector<8x1xf32>
    %30 = math.exp %28 : vector<8x128xf32>
    %31 = vector.broadcast %29 : vector<8x1xf32> to vector<8x128xf32>
    %32 = arith.mulf %31, %30 : vector<8x128xf32>
    %33 = arith.addf %2, %32 : vector<8x128xf32>
    %34 = vector.extract_strided_slice %9 {offsets = [0, 128], sizes = [8, 128], strides = [1, 1]} : vector<8x1024xf32> to vector<8x128xf32>
    %35 = arith.truncf %34 : vector<8x128xf32> to vector<8x128xbf16>
    %c1 = arith.constant 1 : index
    %c0_18 = arith.constant 0 : index
    %c0_19 = arith.constant 0 : index
    %36 = vector.load %arg5[%c1, %c0_18, %c0_19] : memref<8x128x128xbf16, #tpu.memory_space<vmem>>, vector<1x128x128xbf16>
    %37 = vector.shape_cast %36 : vector<1x128x128xbf16> to vector<128x128xbf16>
    %cst_20 = arith.constant dense<0.000000e+00> : vector<8x128xf32>
    %38 = tpu.matmul %35, %37, %cst_20 {dimension_numbers = #tpu.dot_dimension_numbers<[1], [0], [0], [1], [0, 0, 1, 1], [], []>} : vector<8x128xbf16>, vector<128x128xbf16>, vector<8x128xf32> -> vector<8x128xf32>
    %c1_21 = arith.constant 1 : index
    %c0_22 = arith.constant 0 : index
    %c0_23 = arith.constant 0 : index
    %39 = vector.load %arg6[%c1_21, %c0_22, %c0_23] : memref<8x1x128xf32, #tpu.memory_space<vmem>>, vector<1x1x128xf32>
    %40 = vector.shape_cast %39 : vector<1x1x128xf32> to vector<1x128xf32>
    %41 = vector.broadcast %40 : vector<1x128xf32> to vector<8x128xf32>
    %42 = arith.addf %38, %41 : vector<8x128xf32>
    %cst_24 = arith.constant dense<0xFF800000> : vector<8xf32>
    %43 = vector.multi_reduction <maximumf>, %42, %cst_24 [1] : vector<8x128xf32> to vector<8xf32>
    %44 = vector.shape_cast %43 : vector<8xf32> to vector<8x1xf32>
    %45 = vector.broadcast %44 : vector<8x1xf32> to vector<8x128xf32>
    %46 = arith.subf %42, %45 : vector<8x128xf32>
    %47 = math.exp %46 : vector<8x128xf32>
    %cst_25 = arith.constant dense<0.000000e+00> : vector<8xf32>
    %48 = vector.multi_reduction <add>, %47, %cst_25 [1] : vector<8x128xf32> to vector<8xf32>
    %49 = vector.shape_cast %48 : vector<8xf32> to vector<8x1xf32>
    %50 = tpu.reciprocal %49 : vector<8x1xf32> -> vector<8x1xf32>
    %51 = vector.broadcast %50 : vector<8x1xf32> to vector<8x128xf32>
    %52 = arith.mulf %47, %51 : vector<8x128xf32>
    %53 = vector.extract_strided_slice %1 {offsets = [0, 1], sizes = [8, 1], strides = [1, 1]} : vector<8x8xf32> to vector<8x1xf32>
    %54 = math.exp %52 : vector<8x128xf32>
    %55 = vector.broadcast %53 : vector<8x1xf32> to vector<8x128xf32>
    %56 = arith.mulf %55, %54 : vector<8x128xf32>
    %57 = arith.addf %33, %56 : vector<8x128xf32>
    %58 = vector.extract_strided_slice %9 {offsets = [0, 256], sizes = [8, 128], strides = [1, 1]} : vector<8x1024xf32> to vector<8x128xf32>
    %59 = arith.truncf %58 : vector<8x128xf32> to vector<8x128xbf16>
    %c2 = arith.constant 2 : index
    %c0_26 = arith.constant 0 : index
    %c0_27 = arith.constant 0 : index
    %60 = vector.load %arg5[%c2, %c0_26, %c0_27] : memref<8x128x128xbf16, #tpu.memory_space<vmem>>, vector<1x128x128xbf16>
    %61 = vector.shape_cast %60 : vector<1x128x128xbf16> to vector<128x128xbf16>
    %cst_28 = arith.constant dense<0.000000e+00> : vector<8x128xf32>
    %62 = tpu.matmul %59, %61, %cst_28 {dimension_numbers = #tpu.dot_dimension_numbers<[1], [0], [0], [1], [0, 0, 1, 1], [], []>} : vector<8x128xbf16>, vector<128x128xbf16>, vector<8x128xf32> -> vector<8x128xf32>
    %c2_29 = arith.constant 2 : index
    %c0_30 = arith.constant 0 : index
    %c0_31 = arith.constant 0 : index
    %63 = vector.load %arg6[%c2_29, %c0_30, %c0_31] : memref<8x1x128xf32, #tpu.memory_space<vmem>>, vector<1x1x128xf32>
    %64 = vector.shape_cast %63 : vector<1x1x128xf32> to vector<1x128xf32>
    %65 = vector.broadcast %64 : vector<1x128xf32> to vector<8x128xf32>
    %66 = arith.addf %62, %65 : vector<8x128xf32>
    %cst_32 = arith.constant dense<0xFF800000> : vector<8xf32>
    %67 = vector.multi_reduction <maximumf>, %66, %cst_32 [1] : vector<8x128xf32> to vector<8xf32>
    %68 = vector.shape_cast %67 : vector<8xf32> to vector<8x1xf32>
    %69 = vector.broadcast %68 : vector<8x1xf32> to vector<8x128xf32>
    %70 = arith.subf %66, %69 : vector<8x128xf32>
    %71 = math.exp %70 : vector<8x128xf32>
    %cst_33 = arith.constant dense<0.000000e+00> : vector<8xf32>
    %72 = vector.multi_reduction <add>, %71, %cst_33 [1] : vector<8x128xf32> to vector<8xf32>
    %73 = vector.shape_cast %72 : vector<8xf32> to vector<8x1xf32>
    %74 = tpu.reciprocal %73 : vector<8x1xf32> -> vector<8x1xf32>
    %75 = vector.broadcast %74 : vector<8x1xf32> to vector<8x128xf32>
    %76 = arith.mulf %71, %75 : vector<8x128xf32>
    %77 = vector.extract_strided_slice %1 {offsets = [0, 2], sizes = [8, 1], strides = [1, 1]} : vector<8x8xf32> to vector<8x1xf32>
    %78 = math.exp %76 : vector<8x128xf32>
    %79 = vector.broadcast %77 : vector<8x1xf32> to vector<8x128xf32>
    %80 = arith.mulf %79, %78 : vector<8x128xf32>
    %81 = arith.addf %57, %80 : vector<8x128xf32>
    %82 = vector.extract_strided_slice %9 {offsets = [0, 384], sizes = [8, 128], strides = [1, 1]} : vector<8x1024xf32> to vector<8x128xf32>
    %83 = arith.truncf %82 : vector<8x128xf32> to vector<8x128xbf16>
    %c3 = arith.constant 3 : index
    %c0_34 = arith.constant 0 : index
    %c0_35 = arith.constant 0 : index
    %84 = vector.load %arg5[%c3, %c0_34, %c0_35] : memref<8x128x128xbf16, #tpu.memory_space<vmem>>, vector<1x128x128xbf16>
    %85 = vector.shape_cast %84 : vector<1x128x128xbf16> to vector<128x128xbf16>
    %cst_36 = arith.constant dense<0.000000e+00> : vector<8x128xf32>
    %86 = tpu.matmul %83, %85, %cst_36 {dimension_numbers = #tpu.dot_dimension_numbers<[1], [0], [0], [1], [0, 0, 1, 1], [], []>} : vector<8x128xbf16>, vector<128x128xbf16>, vector<8x128xf32> -> vector<8x128xf32>
    %c3_37 = arith.constant 3 : index
    %c0_38 = arith.constant 0 : index
    %c0_39 = arith.constant 0 : index
    %87 = vector.load %arg6[%c3_37, %c0_38, %c0_39] : memref<8x1x128xf32, #tpu.memory_space<vmem>>, vector<1x1x128xf32>
    %88 = vector.shape_cast %87 : vector<1x1x128xf32> to vector<1x128xf32>
    %89 = vector.broadcast %88 : vector<1x128xf32> to vector<8x128xf32>
    %90 = arith.addf %86, %89 : vector<8x128xf32>
    %cst_40 = arith.constant dense<0xFF800000> : vector<8xf32>
    %91 = vector.multi_reduction <maximumf>, %90, %cst_40 [1] : vector<8x128xf32> to vector<8xf32>
    %92 = vector.shape_cast %91 : vector<8xf32> to vector<8x1xf32>
    %93 = vector.broadcast %92 : vector<8x1xf32> to vector<8x128xf32>
    %94 = arith.subf %90, %93 : vector<8x128xf32>
    %95 = math.exp %94 : vector<8x128xf32>
    %cst_41 = arith.constant dense<0.000000e+00> : vector<8xf32>
    %96 = vector.multi_reduction <add>, %95, %cst_41 [1] : vector<8x128xf32> to vector<8xf32>
    %97 = vector.shape_cast %96 : vector<8xf32> to vector<8x1xf32>
    %98 = tpu.reciprocal %97 : vector<8x1xf32> -> vector<8x1xf32>
    %99 = vector.broadcast %98 : vector<8x1xf32> to vector<8x128xf32>
    %100 = arith.mulf %95, %99 : vector<8x128xf32>
    %101 = vector.extract_strided_slice %1 {offsets = [0, 3], sizes = [8, 1], strides = [1, 1]} : vector<8x8xf32> to vector<8x1xf32>
    %102 = math.exp %100 : vector<8x128xf32>
    %103 = vector.broadcast %101 : vector<8x1xf32> to vector<8x128xf32>
    %104 = arith.mulf %103, %102 : vector<8x128xf32>
    %105 = arith.addf %81, %104 : vector<8x128xf32>
    %106 = vector.extract_strided_slice %9 {offsets = [0, 512], sizes = [8, 128], strides = [1, 1]} : vector<8x1024xf32> to vector<8x128xf32>
    %107 = arith.truncf %106 : vector<8x128xf32> to vector<8x128xbf16>
    %c4 = arith.constant 4 : index
    %c0_42 = arith.constant 0 : index
    %c0_43 = arith.constant 0 : index
    %108 = vector.load %arg5[%c4, %c0_42, %c0_43] : memref<8x128x128xbf16, #tpu.memory_space<vmem>>, vector<1x128x128xbf16>
    %109 = vector.shape_cast %108 : vector<1x128x128xbf16> to vector<128x128xbf16>
    %cst_44 = arith.constant dense<0.000000e+00> : vector<8x128xf32>
    %110 = tpu.matmul %107, %109, %cst_44 {dimension_numbers = #tpu.dot_dimension_numbers<[1], [0], [0], [1], [0, 0, 1, 1], [], []>} : vector<8x128xbf16>, vector<128x128xbf16>, vector<8x128xf32> -> vector<8x128xf32>
    %c4_45 = arith.constant 4 : index
    %c0_46 = arith.constant 0 : index
    %c0_47 = arith.constant 0 : index
    %111 = vector.load %arg6[%c4_45, %c0_46, %c0_47] : memref<8x1x128xf32, #tpu.memory_space<vmem>>, vector<1x1x128xf32>
    %112 = vector.shape_cast %111 : vector<1x1x128xf32> to vector<1x128xf32>
    %113 = vector.broadcast %112 : vector<1x128xf32> to vector<8x128xf32>
    %114 = arith.addf %110, %113 : vector<8x128xf32>
    %cst_48 = arith.constant dense<0xFF800000> : vector<8xf32>
    %115 = vector.multi_reduction <maximumf>, %114, %cst_48 [1] : vector<8x128xf32> to vector<8xf32>
    %116 = vector.shape_cast %115 : vector<8xf32> to vector<8x1xf32>
    %117 = vector.broadcast %116 : vector<8x1xf32> to vector<8x128xf32>
    %118 = arith.subf %114, %117 : vector<8x128xf32>
    %119 = math.exp %118 : vector<8x128xf32>
    %cst_49 = arith.constant dense<0.000000e+00> : vector<8xf32>
    %120 = vector.multi_reduction <add>, %119, %cst_49 [1] : vector<8x128xf32> to vector<8xf32>
    %121 = vector.shape_cast %120 : vector<8xf32> to vector<8x1xf32>
    %122 = tpu.reciprocal %121 : vector<8x1xf32> -> vector<8x1xf32>
    %123 = vector.broadcast %122 : vector<8x1xf32> to vector<8x128xf32>
    %124 = arith.mulf %119, %123 : vector<8x128xf32>
    %125 = vector.extract_strided_slice %1 {offsets = [0, 4], sizes = [8, 1], strides = [1, 1]} : vector<8x8xf32> to vector<8x1xf32>
    %126 = math.exp %124 : vector<8x128xf32>
    %127 = vector.broadcast %125 : vector<8x1xf32> to vector<8x128xf32>
    %128 = arith.mulf %127, %126 : vector<8x128xf32>
    %129 = arith.addf %105, %128 : vector<8x128xf32>
    %130 = vector.extract_strided_slice %9 {offsets = [0, 640], sizes = [8, 128], strides = [1, 1]} : vector<8x1024xf32> to vector<8x128xf32>
    %131 = arith.truncf %130 : vector<8x128xf32> to vector<8x128xbf16>
    %c5 = arith.constant 5 : index
    %c0_50 = arith.constant 0 : index
    %c0_51 = arith.constant 0 : index
    %132 = vector.load %arg5[%c5, %c0_50, %c0_51] : memref<8x128x128xbf16, #tpu.memory_space<vmem>>, vector<1x128x128xbf16>
    %133 = vector.shape_cast %132 : vector<1x128x128xbf16> to vector<128x128xbf16>
    %cst_52 = arith.constant dense<0.000000e+00> : vector<8x128xf32>
    %134 = tpu.matmul %131, %133, %cst_52 {dimension_numbers = #tpu.dot_dimension_numbers<[1], [0], [0], [1], [0, 0, 1, 1], [], []>} : vector<8x128xbf16>, vector<128x128xbf16>, vector<8x128xf32> -> vector<8x128xf32>
    %c5_53 = arith.constant 5 : index
    %c0_54 = arith.constant 0 : index
    %c0_55 = arith.constant 0 : index
    %135 = vector.load %arg6[%c5_53, %c0_54, %c0_55] : memref<8x1x128xf32, #tpu.memory_space<vmem>>, vector<1x1x128xf32>
    %136 = vector.shape_cast %135 : vector<1x1x128xf32> to vector<1x128xf32>
    %137 = vector.broadcast %136 : vector<1x128xf32> to vector<8x128xf32>
    %138 = arith.addf %134, %137 : vector<8x128xf32>
    %cst_56 = arith.constant dense<0xFF800000> : vector<8xf32>
    %139 = vector.multi_reduction <maximumf>, %138, %cst_56 [1] : vector<8x128xf32> to vector<8xf32>
    %140 = vector.shape_cast %139 : vector<8xf32> to vector<8x1xf32>
    %141 = vector.broadcast %140 : vector<8x1xf32> to vector<8x128xf32>
    %142 = arith.subf %138, %141 : vector<8x128xf32>
    %143 = math.exp %142 : vector<8x128xf32>
    %cst_57 = arith.constant dense<0.000000e+00> : vector<8xf32>
    %144 = vector.multi_reduction <add>, %143, %cst_57 [1] : vector<8x128xf32> to vector<8xf32>
    %145 = vector.shape_cast %144 : vector<8xf32> to vector<8x1xf32>
    %146 = tpu.reciprocal %145 : vector<8x1xf32> -> vector<8x1xf32>
    %147 = vector.broadcast %146 : vector<8x1xf32> to vector<8x128xf32>
    %148 = arith.mulf %143, %147 : vector<8x128xf32>
    %149 = vector.extract_strided_slice %1 {offsets = [0, 5], sizes = [8, 1], strides = [1, 1]} : vector<8x8xf32> to vector<8x1xf32>
    %150 = math.exp %148 : vector<8x128xf32>
    %151 = vector.broadcast %149 : vector<8x1xf32> to vector<8x128xf32>
    %152 = arith.mulf %151, %150 : vector<8x128xf32>
    %153 = arith.addf %129, %152 : vector<8x128xf32>
    %154 = vector.extract_strided_slice %9 {offsets = [0, 768], sizes = [8, 128], strides = [1, 1]} : vector<8x1024xf32> to vector<8x128xf32>
    %155 = arith.truncf %154 : vector<8x128xf32> to vector<8x128xbf16>
    %c6 = arith.constant 6 : index
    %c0_58 = arith.constant 0 : index
    %c0_59 = arith.constant 0 : index
    %156 = vector.load %arg5[%c6, %c0_58, %c0_59] : memref<8x128x128xbf16, #tpu.memory_space<vmem>>, vector<1x128x128xbf16>
    %157 = vector.shape_cast %156 : vector<1x128x128xbf16> to vector<128x128xbf16>
    %cst_60 = arith.constant dense<0.000000e+00> : vector<8x128xf32>
    %158 = tpu.matmul %155, %157, %cst_60 {dimension_numbers = #tpu.dot_dimension_numbers<[1], [0], [0], [1], [0, 0, 1, 1], [], []>} : vector<8x128xbf16>, vector<128x128xbf16>, vector<8x128xf32> -> vector<8x128xf32>
    %c6_61 = arith.constant 6 : index
    %c0_62 = arith.constant 0 : index
    %c0_63 = arith.constant 0 : index
    %159 = vector.load %arg6[%c6_61, %c0_62, %c0_63] : memref<8x1x128xf32, #tpu.memory_space<vmem>>, vector<1x1x128xf32>
    %160 = vector.shape_cast %159 : vector<1x1x128xf32> to vector<1x128xf32>
    %161 = vector.broadcast %160 : vector<1x128xf32> to vector<8x128xf32>
    %162 = arith.addf %158, %161 : vector<8x128xf32>
    %cst_64 = arith.constant dense<0xFF800000> : vector<8xf32>
    %163 = vector.multi_reduction <maximumf>, %162, %cst_64 [1] : vector<8x128xf32> to vector<8xf32>
    %164 = vector.shape_cast %163 : vector<8xf32> to vector<8x1xf32>
    %165 = vector.broadcast %164 : vector<8x1xf32> to vector<8x128xf32>
    %166 = arith.subf %162, %165 : vector<8x128xf32>
    %167 = math.exp %166 : vector<8x128xf32>
    %cst_65 = arith.constant dense<0.000000e+00> : vector<8xf32>
    %168 = vector.multi_reduction <add>, %167, %cst_65 [1] : vector<8x128xf32> to vector<8xf32>
    %169 = vector.shape_cast %168 : vector<8xf32> to vector<8x1xf32>
    %170 = tpu.reciprocal %169 : vector<8x1xf32> -> vector<8x1xf32>
    %171 = vector.broadcast %170 : vector<8x1xf32> to vector<8x128xf32>
    %172 = arith.mulf %167, %171 : vector<8x128xf32>
    %173 = vector.extract_strided_slice %1 {offsets = [0, 6], sizes = [8, 1], strides = [1, 1]} : vector<8x8xf32> to vector<8x1xf32>
    %174 = math.exp %172 : vector<8x128xf32>
    %175 = vector.broadcast %173 : vector<8x1xf32> to vector<8x128xf32>
    %176 = arith.mulf %175, %174 : vector<8x128xf32>
    %177 = arith.addf %153, %176 : vector<8x128xf32>
    %178 = vector.extract_strided_slice %9 {offsets = [0, 896], sizes = [8, 128], strides = [1, 1]} : vector<8x1024xf32> to vector<8x128xf32>
    %179 = arith.truncf %178 : vector<8x128xf32> to vector<8x128xbf16>
    %c7 = arith.constant 7 : index
    %c0_66 = arith.constant 0 : index
    %c0_67 = arith.constant 0 : index
    %180 = vector.load %arg5[%c7, %c0_66, %c0_67] : memref<8x128x128xbf16, #tpu.memory_space<vmem>>, vector<1x128x128xbf16>
    %181 = vector.shape_cast %180 : vector<1x128x128xbf16> to vector<128x128xbf16>
    %cst_68 = arith.constant dense<0.000000e+00> : vector<8x128xf32>
    %182 = tpu.matmul %179, %181, %cst_68 {dimension_numbers = #tpu.dot_dimension_numbers<[1], [0], [0], [1], [0, 0, 1, 1], [], []>} : vector<8x128xbf16>, vector<128x128xbf16>, vector<8x128xf32> -> vector<8x128xf32>
    %c7_69 = arith.constant 7 : index
    %c0_70 = arith.constant 0 : index
    %c0_71 = arith.constant 0 : index
    %183 = vector.load %arg6[%c7_69, %c0_70, %c0_71] : memref<8x1x128xf32, #tpu.memory_space<vmem>>, vector<1x1x128xf32>
    %184 = vector.shape_cast %183 : vector<1x1x128xf32> to vector<1x128xf32>
    %185 = vector.broadcast %184 : vector<1x128xf32> to vector<8x128xf32>
    %186 = arith.addf %182, %185 : vector<8x128xf32>
    %cst_72 = arith.constant dense<0xFF800000> : vector<8xf32>
    %187 = vector.multi_reduction <maximumf>, %186, %cst_72 [1] : vector<8x128xf32> to vector<8xf32>
    %188 = vector.shape_cast %187 : vector<8xf32> to vector<8x1xf32>
    %189 = vector.broadcast %188 : vector<8x1xf32> to vector<8x128xf32>
    %190 = arith.subf %186, %189 : vector<8x128xf32>
    %191 = math.exp %190 : vector<8x128xf32>
    %cst_73 = arith.constant dense<0.000000e+00> : vector<8xf32>
    %192 = vector.multi_reduction <add>, %191, %cst_73 [1] : vector<8x128xf32> to vector<8xf32>
    %193 = vector.shape_cast %192 : vector<8xf32> to vector<8x1xf32>
    %194 = tpu.reciprocal %193 : vector<8x1xf32> -> vector<8x1xf32>
    %195 = vector.broadcast %194 : vector<8x1xf32> to vector<8x128xf32>
    %196 = arith.mulf %191, %195 : vector<8x128xf32>
    %197 = vector.extract_strided_slice %1 {offsets = [0, 7], sizes = [8, 1], strides = [1, 1]} : vector<8x8xf32> to vector<8x1xf32>
    %198 = math.exp %196 : vector<8x128xf32>
    %199 = vector.broadcast %197 : vector<8x1xf32> to vector<8x128xf32>
    %200 = arith.mulf %199, %198 : vector<8x128xf32>
    %201 = arith.addf %177, %200 : vector<8x128xf32>
    %cst_74 = arith.constant 0.000000e+00 : f32
    %202 = vector.broadcast %cst_74 : f32 to vector<8x128xf32>
    %203 = arith.cmpf oeq, %201, %202 : vector<8x128xf32>
    %cst_75 = arith.constant 2.22044605E-16 : f32
    %204 = vector.broadcast %cst_75 : f32 to vector<8x128xf32>
    %205 = arith.select %203, %204, %201 : vector<8x128xi1>, vector<8x128xf32>
    %206 = math.log %205 : vector<8x128xf32>
    %c0_76 = arith.constant 0 : index
    %c0_77 = arith.constant 0 : index
    %207 = vector.load %arg7[%c0_76, %c0_77] : memref<8x128xf32, #tpu.memory_space<vmem>>, vector<8x128xf32>
    tpu.vector_store %arg7[%c0_76, %c0_77], %206 {strides = array<i32>} : memref<8x128xf32, #tpu.memory_space<vmem>>, vector<8x128xf32>,
    return
  }
  func.func @transform_0(%arg0: i32) -> (i32, i32) {
    %c0_i32 = arith.constant 0 : i32
    %c0_i32_0 = arith.constant 0 : i32
    return %arg0, %c0_i32 : i32, i32
  }
  func.func @transform_1(%arg0: i32) -> (i32, i32) {
    %c0_i32 = arith.constant 0 : i32
    %c0_i32_0 = arith.constant 0 : i32
    return %arg0, %c0_i32 : i32, i32
  }
  func.func @transform_2(%arg0: i32) -> (i32, i32) {
    %c0_i32 = arith.constant 0 : i32
    %c0_i32_0 = arith.constant 0 : i32
    %c0_i32_1 = arith.constant 0 : i32
    return %c0_i32, %c0_i32_0 : i32, i32
  }
  func.func @transform_3(%arg0: i32) -> (i32, i32) {
    %c0_i32 = arith.constant 0 : i32
    %c0_i32_0 = arith.constant 0 : i32
    %c0_i32_1 = arith.constant 0 : i32
    return %c0_i32, %c0_i32_0 : i32, i32
  }
  func.func @transform_4(%arg0: i32) -> (i32, i32, i32) {
    %c0_i32 = arith.constant 0 : i32
    %c0_i32_0 = arith.constant 0 : i32
    %c0_i32_1 = arith.constant 0 : i32
    %c0_i32_2 = arith.constant 0 : i32
    return %c0_i32, %c0_i32_0, %c0_i32_1 : i32, i32, i32
  }
  func.func @transform_5(%arg0: i32) -> (i32, i32, i32) {
    %c0_i32 = arith.constant 0 : i32
    %c0_i32_0 = arith.constant 0 : i32
    %c0_i32_1 = arith.constant 0 : i32
    %c0_i32_2 = arith.constant 0 : i32
    return %c0_i32, %c0_i32_0, %c0_i32_1 : i32, i32, i32
  }
  func.func @transform_6(%arg0: i32) -> (i32, i32) {
    %c0_i32 = arith.constant 0 : i32
    %c0_i32_0 = arith.constant 0 : i32
    return %arg0, %c0_i32 : i32, i32
  }
}

module attributes {stable_mosaic.version = 11 : i64} {
  func.func @kernel(%arg0: i32, %arg1: memref<8x32xbf16, #tpu.memory_space<vmem>>, %arg2: memref<8x8xf32, #tpu.memory_space<vmem>>, %arg3: memref<32x1024xbf16, #tpu.memory_space<vmem>>, %arg4: memref<1x1024xf32, #tpu.memory_space<vmem>>, %arg5: memref<8x128x128xbf16, #tpu.memory_space<vmem>>, %arg6: memref<8x1x128xf32, #tpu.memory_space<vmem>>, %arg7: memref<8x128xf32, #tpu.memory_space<vmem>>) attributes {dimension_semantics = [#tpu.dimension_semantics<parallel>], iteration_bounds = array<i64: 1>, scalar_prefetch = 0 : i64, scratch_operands = 0 : i64, tpu.core_type = #tpu.core_type<tc>, window_params = [{transform_indices = @transform_0, window_bounds = array<i64: 8, 32>}, {transform_indices = @transform_1, window_bounds = array<i64: 8, 8>}, {pipeline_mode = #tpu.pipeline_mode<synchronous>, transform_indices = @transform_2, window_bounds = array<i64: 32, 1024>}, {pipeline_mode = #tpu.pipeline_mode<synchronous>, transform_indices = @transform_3, window_bounds = array<i64: 1, 1024>}, {pipeline_mode = #tpu.pipeline_mode<synchronous>, transform_indices = @transform_4, window_bounds = array<i64: 8, 128, 128>}, {pipeline_mode = #tpu.pipeline_mode<synchronous>, transform_indices = @transform_5, window_bounds = array<i64: 8, 1, 128>}, {transform_indices = @transform_6, window_bounds = array<i64: 8, 128>}]} {
    %c0 = arith.constant 0 : index
    %c0_0 = arith.constant 0 : index
    %0 = vector.load %arg1[%c0, %c0_0] : memref<8x32xbf16, #tpu.memory_space<vmem>>, vector<8x32xbf16>
    %c0_1 = arith.constant 0 : index
    %c0_2 = arith.constant 0 : index
    %1 = vector.load %arg2[%c0_1, %c0_2] : memref<8x8xf32, #tpu.memory_space<vmem>>, vector<8x8xf32>
    %cst = arith.constant 0.000000e+00 : f32
    %2 = vector.broadcast %cst : f32 to vector<8x128xf32>
    %c0_3 = arith.constant 0 : index
    %c0_4 = arith.constant 0 : index
    %3 = vector.load %arg3[%c0_3, %c0_4] : memref<32x1024xbf16, #tpu.memory_space<vmem>>, vector<32x1024xbf16>
    %cst_5 = arith.constant dense<0.000000e+00> : vector<8x1024xf32>
    %4 = tpu.matmul %0, %3, %cst_5 {dimension_numbers = #tpu.dot_dimension_numbers<[1], [0], [0], [1], [0, 0, 1, 1], [], []>} : vector<8x32xbf16>, vector<32x1024xbf16>, vector<8x1024xf32> -> vector<8x1024xf32>
    %c0_6 = arith.constant 0 : index
    %c0_7 = arith.constant 0 : index
    %5 = vector.load %arg4[%c0_6, %c0_7] : memref<1x1024xf32, #tpu.memory_space<vmem>>, vector<1x1024xf32>
    %6 = vector.broadcast %5 : vector<1x1024xf32> to vector<8x1024xf32>
    %7 = arith.addf %4, %6 : vector<8x1024xf32>
    %cst_8 = arith.constant 0.000000e+00 : f32
    %8 = vector.broadcast %cst_8 : f32 to vector<8x1024xf32>
    %9 = arith.maximumf %7, %8 : vector<8x1024xf32>
    %10 = vector.extract_strided_slice %9 {offsets = [0, 0], sizes = [8, 128], strides = [1, 1]} : vector<8x1024xf32> to vector<8x128xf32>
    %11 = arith.truncf %10 : vector<8x128xf32> to vector<8x128xbf16>
    %c0_9 = arith.constant 0 : index
    %c0_10 = arith.constant 0 : index
    %c0_11 = arith.constant 0 : index
    %12 = vector.load %arg5[%c0_9, %c0_10, %c0_11] : memref<8x128x128xbf16, #tpu.memory_space<vmem>>, vector<1x128x128xbf16>
    %13 = vector.shape_cast %12 : vector<1x128x128xbf16> to vector<128x128xbf16>
    %cst_12 = arith.constant dense<0.000000e+00> : vector<8x128xf32>
    %14 = tpu.matmul %11, %13, %cst_12 {dimension_numbers = #tpu.dot_dimension_numbers<[1], [0], [0], [1], [0, 0, 1, 1], [], []>} : vector<8x128xbf16>, vector<128x128xbf16>, vector<8x128xf32> -> vector<8x128xf32>
    %c0_13 = arith.constant 0 : index
    %c0_14 = arith.constant 0 : index
    %c0_15 = arith.constant 0 : index
    %15 = vector.load %arg6[%c0_13, %c0_14, %c0_15] : memref<8x1x128xf32, #tpu.memory_space<vmem>>, vector<1x1x128xf32>
    %16 = vector.shape_cast %15 : vector<1x1x128xf32> to vector<1x128xf32>
    %17 = vector.broadcast %16 : vector<1x128xf32> to vector<8x128xf32>
    %18 = arith.addf %14, %17 : vector<8x128xf32>
    %cst_16 = arith.constant dense<0xFF800000> : vector<8xf32>
    %19 = vector.multi_reduction <maximumf>, %18, %cst_16 [1] : vector<8x128xf32> to vector<8xf32>
    %20 = vector.shape_cast %19 : vector<8xf32> to vector<8x1xf32>
    %21 = vector.broadcast %20 : vector<8x1xf32> to vector<8x128xf32>
    %22 = arith.subf %18, %21 : vector<8x128xf32>
    %23 = math.exp %22 : vector<8x128xf32>
    %cst_17 = arith.constant dense<0.000000e+00> : vector<8xf32>
    %24 = vector.multi_reduction <add>, %23, %cst_17 [1] : vector<8x128xf32> to vector<8xf32>
    %25 = vector.shape_cast %24 : vector<8xf32> to vector<8x1xf32>
    %26 = tpu.reciprocal %25 : vector<8x1xf32> -> vector<8x1xf32>
    %27 = vector.broadcast %26 : vector<8x1xf32> to vector<8x128xf32>
    %28 = arith.mulf %23, %27 : vector<8x128xf32>
    %29 = vector.extract_strided_slice %1 {offsets = [0, 0], sizes = [8, 1], strides = [1, 1]} : vector<8x8xf32> to vector<8x1xf32>
    %30 = math.exp %28 : vector<8x128xf32>
    %31 = vector.broadcast %29 : vector<8x1xf32> to vector<8x128xf32>
    %32 = arith.mulf %31, %30 : vector<8x128xf32>
    %33 = arith.addf %2, %32 : vector<8x128xf32>
    %34 = vector.extract_strided_slice %9 {offsets = [0, 128], sizes = [8, 128], strides = [1, 1]} : vector<8x1024xf32> to vector<8x128xf32>
    %35 = arith.truncf %34 : vector<8x128xf32> to vector<8x128xbf16>
    %c1 = arith.constant 1 : index
    %c0_18 = arith.constant 0 : index
    %c0_19 = arith.constant 0 : index
    %36 = vector.load %arg5[%c1, %c0_18, %c0_19] : memref<8x128x128xbf16, #tpu.memory_space<vmem>>, vector<1x128x128xbf16>
    %37 = vector.shape_cast %36 : vector<1x128x128xbf16> to vector<128x128xbf16>
    %cst_20 = arith.constant dense<0.000000e+00> : vector<8x128xf32>
    %38 = tpu.matmul %35, %37, %cst_20 {dimension_numbers = #tpu.dot_dimension_numbers<[1], [0], [0], [1], [0, 0, 1, 1], [], []>} : vector<8x128xbf16>, vector<128x128xbf16>, vector<8x128xf32> -> vector<8x128xf32>
    %c1_21 = arith.constant 1 : index
    %c0_22 = arith.constant 0 : index
    %c0_23 = arith.constant 0 : index
    %39 = vector.load %arg6[%c1_21, %c0_22, %c0_23] : memref<8x1x128xf32, #tpu.memory_space<vmem>>, vector<1x1x128xf32>
    %40 = vector.shape_cast %39 : vector<1x1x128xf32> to vector<1x128xf32>
    %41 = vector.broadcast %40 : vector<1x128xf32> to vector<8x128xf32>
    %42 = arith.addf %38, %41 : vector<8x128xf32>
    %cst_24 = arith.constant dense<0xFF800000> : vector<8xf32>
    %43 = vector.multi_reduction <maximumf>, %42, %cst_24 [1] : vector<8x128xf32> to vector<8xf32>
    %44 = vector.shape_cast %43 : vector<8xf32> to vector<8x1xf32>
    %45 = vector.broadcast %44 : vector<8x1xf32> to vector<8x128xf32>
    %46 = arith.subf %42, %45 : vector<8x128xf32>
    %47 = math.exp %46 : vector<8x128xf32>
    %cst_25 = arith.constant dense<0.000000e+00> : vector<8xf32>
    %48 = vector.multi_reduction <add>, %47, %cst_25 [1] : vector<8x128xf32> to vector<8xf32>
    %49 = vector.shape_cast %48 : vector<8xf32> to vector<8x1xf32>
    %50 = tpu.reciprocal %49 : vector<8x1xf32> -> vector<8x1xf32>
    %51 = vector.broadcast %50 : vector<8x1xf32> to vector<8x128xf32>
    %52 = arith.mulf %47, %51 : vector<8x128xf32>
    %53 = vector.extract_strided_slice %1 {offsets = [0, 1], sizes = [8, 1], strides = [1, 1]} : vector<8x8xf32> to vector<8x1xf32>
    %54 = math.exp %52 : vector<8x128xf32>
    %55 = vector.broadcast %53 : vector<8x1xf32> to vector<8x128xf32>
    %56 = arith.mulf %55, %54 : vector<8x128xf32>
    %57 = arith.addf %33, %56 : vector<8x128xf32>
    %58 = vector.extract_strided_slice %9 {offsets = [0, 256], sizes = [8, 128], strides = [1, 1]} : vector<8x1024xf32> to vector<8x128xf32>
    %59 = arith.truncf %58 : vector<8x128xf32> to vector<8x128xbf16>
    %c2 = arith.constant 2 : index
    %c0_26 = arith.constant 0 : index
    %c0_27 = arith.constant 0 : index
    %60 = vector.load %arg5[%c2, %c0_26, %c0_27] : memref<8x128x128xbf16, #tpu.memory_space<vmem>>, vector<1x128x128xbf16>
    %61 = vector.shape_cast %60 : vector<1x128x128xbf16> to vector<128x128xbf16>
    %cst_28 = arith.constant dense<0.000000e+00> : vector<8x128xf32>
    %62 = tpu.matmul %59, %61, %cst_28 {dimension_numbers = #tpu.dot_dimension_numbers<[1], [0], [0], [1], [0, 0, 1, 1], [], []>} : vector<8x128xbf16>, vector<128x128xbf16>, vector<8x128xf32> -> vector<8x128xf32>
    %c2_29 = arith.constant 2 : index
    %c0_30 = arith.constant 0 : index
    %c0_31 = arith.constant 0 : index
    %63 = vector.load %arg6[%c2_29, %c0_30, %c0_31] : memref<8x1x128xf32, #tpu.memory_space<vmem>>, vector<1x1x128xf32>
    %64 = vector.shape_cast %63 : vector<1x1x128xf32> to vector<1x128xf32>
    %65 = vector.broadcast %64 : vector<1x128xf32> to vector<8x128xf32>
    %66 = arith.addf %62, %65 : vector<8x128xf32>
    %cst_32 = arith.constant dense<0xFF800000> : vector<8xf32>
    %67 = vector.multi_reduction <maximumf>, %66, %cst_32 [1] : vector<8x128xf32> to vector<8xf32>
    %68 = vector.shape_cast %67 : vector<8xf32> to vector<8x1xf32>
    %69 = vector.broadcast %68 : vector<8x1xf32> to vector<8x128xf32>
    %70 = arith.subf %66, %69 : vector<8x128xf32>
    %71 = math.exp %70 : vector<8x128xf32>
    %cst_33 = arith.constant dense<0.000000e+00> : vector<8xf32>
    %72 = vector.multi_reduction <add>, %71, %cst_33 [1] : vector<8x128xf32> to vector<8xf32>
    %73 = vector.shape_cast %72 : vector<8xf32> to vector<8x1xf32>
    %74 = tpu.reciprocal %73 : vector<8x1xf32> -> vector<8x1xf32>
    %75 = vector.broadcast %74 : vector<8x1xf32> to vector<8x128xf32>
    %76 = arith.mulf %71, %75 : vector<8x128xf32>
    %77 = vector.extract_strided_slice %1 {offsets = [0, 2], sizes = [8, 1], strides = [1, 1]} : vector<8x8xf32> to vector<8x1xf32>
    %78 = math.exp %76 : vector<8x128xf32>
    %79 = vector.broadcast %77 : vector<8x1xf32> to vector<8x128xf32>
    %80 = arith.mulf %79, %78 : vector<8x128xf32>
    %81 = arith.addf %57, %80 : vector<8x128xf32>
    %82 = vector.extract_strided_slice %9 {offsets = [0, 384], sizes = [8, 128], strides = [1, 1]} : vector<8x1024xf32> to vector<8x128xf32>
    %83 = arith.truncf %82 : vector<8x128xf32> to vector<8x128xbf16>
    %c3 = arith.constant 3 : index
    %c0_34 = arith.constant 0 : index
    %c0_35 = arith.constant 0 : index
    %84 = vector.load %arg5[%c3, %c0_34, %c0_35] : memref<8x128x128xbf16, #tpu.memory_space<vmem>>, vector<1x128x128xbf16>
    %85 = vector.shape_cast %84 : vector<1x128x128xbf16> to vector<128x128xbf16>
    %cst_36 = arith.constant dense<0.000000e+00> : vector<8x128xf32>
    %86 = tpu.matmul %83, %85, %cst_36 {dimension_numbers = #tpu.dot_dimension_numbers<[1], [0], [0], [1], [0, 0, 1, 1], [], []>} : vector<8x128xbf16>, vector<128x128xbf16>, vector<8x128xf32> -> vector<8x128xf32>
    %c3_37 = arith.constant 3 : index
    %c0_38 = arith.constant 0 : index
    %c0_39 = arith.constant 0 : index
    %87 = vector.load %arg6[%c3_37, %c0_38, %c0_39] : memref<8x1x128xf32, #tpu.memory_space<vmem>>, vector<1x1x128xf32>
    %88 = vector.shape_cast %87 : vector<1x1x128xf32> to vector<1x128xf32>
    %89 = vector.broadcast %88 : vector<1x128xf32> to vector<8x128xf32>
    %90 = arith.addf %86, %89 : vector<8x128xf32>
    %cst_40 = arith.constant dense<0xFF800000> : vector<8xf32>
    %91 = vector.multi_reduction <maximumf>, %90, %cst_40 [1] : vector<8x128xf32> to vector<8xf32>
    %92 = vector.shape_cast %91 : vector<8xf32> to vector<8x1xf32>
    %93 = vector.broadcast %92 : vector<8x1xf32> to vector<8x128xf32>
    %94 = arith.subf %90, %93 : vector<8x128xf32>
    %95 = math.exp %94 : vector<8x128xf32>
    %cst_41 = arith.constant dense<0.000000e+00> : vector<8xf32>
    %96 = vector.multi_reduction <add>, %95, %cst_41 [1] : vector<8x128xf32> to vector<8xf32>
    %97 = vector.shape_cast %96 : vector<8xf32> to vector<8x1xf32>
    %98 = tpu.reciprocal %97 : vector<8x1xf32> -> vector<8x1xf32>
    %99 = vector.broadcast %98 : vector<8x1xf32> to vector<8x128xf32>
    %100 = arith.mulf %95, %99 : vector<8x128xf32>
    %101 = vector.extract_strided_slice %1 {offsets = [0, 3], sizes = [8, 1], strides = [1, 1]} : vector<8x8xf32> to vector<8x1xf32>
    %102 = math.exp %100 : vector<8x128xf32>
    %103 = vector.broadcast %101 : vector<8x1xf32> to vector<8x128xf32>
    %104 = arith.mulf %103, %102 : vector<8x128xf32>
    %105 = arith.addf %81, %104 : vector<8x128xf32>
    %106 = vector.extract_strided_slice %9 {offsets = [0, 512], sizes = [8, 128], strides = [1, 1]} : vector<8x1024xf32> to vector<8x128xf32>
    %107 = arith.truncf %106 : vector<8x128xf32> to vector<8x128xbf16>
    %c4 = arith.constant 4 : index
    %c0_42 = arith.constant 0 : index
    %c0_43 = arith.constant 0 : index
    %108 = vector.load %arg5[%c4, %c0_42, %c0_43] : memref<8x128x128xbf16, #tpu.memory_space<vmem>>, vector<1x128x128xbf16>
    %109 = vector.shape_cast %108 : vector<1x128x128xbf16> to vector<128x128xbf16>
    %cst_44 = arith.constant dense<0.000000e+00> : vector<8x128xf32>
    %110 = tpu.matmul %107, %109, %cst_44 {dimension_numbers = #tpu.dot_dimension_numbers<[1], [0], [0], [1], [0, 0, 1, 1], [], []>} : vector<8x128xbf16>, vector<128x128xbf16>, vector<8x128xf32> -> vector<8x128xf32>
    %c4_45 = arith.constant 4 : index
    %c0_46 = arith.constant 0 : index
    %c0_47 = arith.constant 0 : index
    %111 = vector.load %arg6[%c4_45, %c0_46, %c0_47] : memref<8x1x128xf32, #tpu.memory_space<vmem>>, vector<1x1x128xf32>
    %112 = vector.shape_cast %111 : vector<1x1x128xf32> to vector<1x128xf32>
    %113 = vector.broadcast %112 : vector<1x128xf32> to vector<8x128xf32>
    %114 = arith.addf %110, %113 : vector<8x128xf32>
    %cst_48 = arith.constant dense<0xFF800000> : vector<8xf32>
    %115 = vector.multi_reduction <maximumf>, %114, %cst_48 [1] : vector<8x128xf32> to vector<8xf32>
    %116 = vector.shape_cast %115 : vector<8xf32> to vector<8x1xf32>
    %117 = vector.broadcast %116 : vector<8x1xf32> to vector<8x128xf32>
    %118 = arith.subf %114, %117 : vector<8x128xf32>
    %119 = math.exp %118 : vector<8x128xf32>
    %cst_49 = arith.constant dense<0.000000e+00> : vector<8xf32>
    %120 = vector.multi_reduction <add>, %119, %cst_49 [1] : vector<8x128xf32> to vector<8xf32>
    %121 = vector.shape_cast %120 : vector<8xf32> to vector<8x1xf32>
    %122 = tpu.reciprocal %121 : vector<8x1xf32> -> vector<8x1xf32>
    %123 = vector.broadcast %122 : vector<8x1xf32> to vector<8x128xf32>
    %124 = arith.mulf %119, %123 : vector<8x128xf32>
    %125 = vector.extract_strided_slice %1 {offsets = [0, 4], sizes = [8, 1], strides = [1, 1]} : vector<8x8xf32> to vector<8x1xf32>
    %126 = math.exp %124 : vector<8x128xf32>
    %127 = vector.broadcast %125 : vector<8x1xf32> to vector<8x128xf32>
    %128 = arith.mulf %127, %126 : vector<8x128xf32>
    %129 = arith.addf %105, %128 : vector<8x128xf32>
    %130 = vector.extract_strided_slice %9 {offsets = [0, 640], sizes = [8, 128], strides = [1, 1]} : vector<8x1024xf32> to vector<8x128xf32>
    %131 = arith.truncf %130 : vector<8x128xf32> to vector<8x128xbf16>
    %c5 = arith.constant 5 : index
    %c0_50 = arith.constant 0 : index
    %c0_51 = arith.constant 0 : index
    %132 = vector.load %arg5[%c5, %c0_50, %c0_51] : memref<8x128x128xbf16, #tpu.memory_space<vmem>>, vector<1x128x128xbf16>
    %133 = vector.shape_cast %132 : vector<1x128x128xbf16> to vector<128x128xbf16>
    %cst_52 = arith.constant dense<0.000000e+00> : vector<8x128xf32>
    %134 = tpu.matmul %131, %133, %cst_52 {dimension_numbers = #tpu.dot_dimension_numbers<[1], [0], [0], [1], [0, 0, 1, 1], [], []>} : vector<8x128xbf16>, vector<128x128xbf16>, vector<8x128xf32> -> vector<8x128xf32>
    %c5_53 = arith.constant 5 : index
    %c0_54 = arith.constant 0 : index
    %c0_55 = arith.constant 0 : index
    %135 = vector.load %arg6[%c5_53, %c0_54, %c0_55] : memref<8x1x128xf32, #tpu.memory_space<vmem>>, vector<1x1x128xf32>
    %136 = vector.shape_cast %135 : vector<1x1x128xf32> to vector<1x128xf32>
    %137 = vector.broadcast %136 : vector<1x128xf32> to vector<8x128xf32>
    %138 = arith.addf %134, %137 : vector<8x128xf32>
    %cst_56 = arith.constant dense<0xFF800000> : vector<8xf32>
    %139 = vector.multi_reduction <maximumf>, %138, %cst_56 [1] : vector<8x128xf32> to vector<8xf32>
    %140 = vector.shape_cast %139 : vector<8xf32> to vector<8x1xf32>
    %141 = vector.broadcast %140 : vector<8x1xf32> to vector<8x128xf32>
    %142 = arith.subf %138, %141 : vector<8x128xf32>
    %143 = math.exp %142 : vector<8x128xf32>
    %cst_57 = arith.constant dense<0.000000e+00> : vector<8xf32>
    %144 = vector.multi_reduction <add>, %143, %cst_57 [1] : vector<8x128xf32> to vector<8xf32>
    %145 = vector.shape_cast %144 : vector<8xf32> to vector<8x1xf32>
    %146 = tpu.reciprocal %145 : vector<8x1xf32> -> vector<8x1xf32>
    %147 = vector.broadcast %146 : vector<8x1xf32> to vector<8x128xf32>
    %148 = arith.mulf %143, %147 : vector<8x128xf32>
    %149 = vector.extract_strided_slice %1 {offsets = [0, 5], sizes = [8, 1], strides = [1, 1]} : vector<8x8xf32> to vector<8x1xf32>
    %150 = math.exp %148 : vector<8x128xf32>
    %151 = vector.broadcast %149 : vector<8x1xf32> to vector<8x128xf32>
    %152 = arith.mulf %151, %150 : vector<8x128xf32>
    %153 = arith.addf %129, %152 : vector<8x128xf32>
    %154 = vector.extract_strided_slice %9 {offsets = [0, 768], sizes = [8, 128], strides = [1, 1]} : vector<8x1024xf32> to vector<8x128xf32>
    %155 = arith.truncf %154 : vector<8x128xf32> to vector<8x128xbf16>
    %c6 = arith.constant 6 : index
    %c0_58 = arith.constant 0 : index
    %c0_59 = arith.constant 0 : index
    %156 = vector.load %arg5[%c6, %c0_58, %c0_59] : memref<8x128x128xbf16, #tpu.memory_space<vmem>>, vector<1x128x128xbf16>
    %157 = vector.shape_cast %156 : vector<1x128x128xbf16> to vector<128x128xbf16>
    %cst_60 = arith.constant dense<0.000000e+00> : vector<8x128xf32>
    %158 = tpu.matmul %155, %157, %cst_60 {dimension_numbers = #tpu.dot_dimension_numbers<[1], [0], [0], [1], [0, 0, 1, 1], [], []>} : vector<8x128xbf16>, vector<128x128xbf16>, vector<8x128xf32> -> vector<8x128xf32>
    %c6_61 = arith.constant 6 : index
    %c0_62 = arith.constant 0 : index
    %c0_63 = arith.constant 0 : index
    %159 = vector.load %arg6[%c6_61, %c0_62, %c0_63] : memref<8x1x128xf32, #tpu.memory_space<vmem>>, vector<1x1x128xf32>
    %160 = vector.shape_cast %159 : vector<1x1x128xf32> to vector<1x128xf32>
    %161 = vector.broadcast %160 : vector<1x128xf32> to vector<8x128xf32>
    %162 = arith.addf %158, %161 : vector<8x128xf32>
    %cst_64 = arith.constant dense<0xFF800000> : vector<8xf32>
    %163 = vector.multi_reduction <maximumf>, %162, %cst_64 [1] : vector<8x128xf32> to vector<8xf32>
    %164 = vector.shape_cast %163 : vector<8xf32> to vector<8x1xf32>
    %165 = vector.broadcast %164 : vector<8x1xf32> to vector<8x128xf32>
    %166 = arith.subf %162, %165 : vector<8x128xf32>
    %167 = math.exp %166 : vector<8x128xf32>
    %cst_65 = arith.constant dense<0.000000e+00> : vector<8xf32>
    %168 = vector.multi_reduction <add>, %167, %cst_65 [1] : vector<8x128xf32> to vector<8xf32>
    %169 = vector.shape_cast %168 : vector<8xf32> to vector<8x1xf32>
    %170 = tpu.reciprocal %169 : vector<8x1xf32> -> vector<8x1xf32>
    %171 = vector.broadcast %170 : vector<8x1xf32> to vector<8x128xf32>
    %172 = arith.mulf %167, %171 : vector<8x128xf32>
    %173 = vector.extract_strided_slice %1 {offsets = [0, 6], sizes = [8, 1], strides = [1, 1]} : vector<8x8xf32> to vector<8x1xf32>
    %174 = math.exp %172 : vector<8x128xf32>
    %175 = vector.broadcast %173 : vector<8x1xf32> to vector<8x128xf32>
    %176 = arith.mulf %175, %174 : vector<8x128xf32>
    %177 = arith.addf %153, %176 : vector<8x128xf32>
    %178 = vector.extract_strided_slice %9 {offsets = [0, 896], sizes = [8, 128], strides = [1, 1]} : vector<8x1024xf32> to vector<8x128xf32>
    %179 = arith.truncf %178 : vector<8x128xf32> to vector<8x128xbf16>
    %c7 = arith.constant 7 : index
    %c0_66 = arith.constant 0 : index
    %c0_67 = arith.constant 0 : index
    %180 = vector.load %arg5[%c7, %c0_66, %c0_67] : memref<8x128x128xbf16, #tpu.memory_space<vmem>>, vector<1x128x128xbf16>
    %181 = vector.shape_cast %180 : vector<1x128x128xbf16> to vector<128x128xbf16>
    %cst_68 = arith.constant dense<0.000000e+00> : vector<8x128xf32>
    %182 = tpu.matmul %179, %181, %cst_68 {dimension_numbers = #tpu.dot_dimension_numbers<[1], [0], [0], [1], [0, 0, 1, 1], [], []>} : vector<8x128xbf16>, vector<128x128xbf16>, vector<8x128xf32> -> vector<8x128xf32>
    %c7_69 = arith.constant 7 : index
    %c0_70 = arith.constant 0 : index
    %c0_71 = arith.constant 0 : index
    %183 = vector.load %arg6[%c7_69, %c0_70, %c0_71] : memref<8x1x128xf32, #tpu.memory_space<vmem>>, vector<1x1x128xf32>
    %184 = vector.shape_cast %183 : vector<1x1x128xf32> to vector<1x128xf32>
    %185 = vector.broadcast %184 : vector<1x128xf32> to vector<8x128xf32>
    %186 = arith.addf %182, %185 : vector<8x128xf32>
    %cst_72 = arith.constant dense<0xFF800000> : vector<8xf32>
    %187 = vector.multi_reduction <maximumf>, %186, %cst_72 [1] : vector<8x128xf32> to vector<8xf32>
    %188 = vector.shape_cast %187 : vector<8xf32> to vector<8x1xf32>
    %189 = vector.broadcast %188 : vector<8x1xf32> to vector<8x128xf32>
    %190 = arith.subf %186, %189 : vector<8x128xf32>
    %191 = math.exp %190 : vector<8x128xf32>
    %cst_73 = arith.constant dense<0.000000e+00> : vector<8xf32>
    %192 = vector.multi_reduction <add>, %191, %cst_73 [1] : vector<8x128xf32> to vector<8xf32>
    %193 = vector.shape_cast %192 : vector<8xf32> to vector<8x1xf32>
    %194 = tpu.reciprocal %193 : vector<8x1xf32> -> vector<8x1xf32>
    %195 = vector.broadcast %194 : vector<8x1xf32> to vector<8x128xf32>
    %196 = arith.mulf %191, %195 : vector<8x128xf32>
    %197 = vector.extract_strided_slice %1 {offsets = [0, 7], sizes = [8, 1], strides = [1, 1]} : vector<8x8xf32> to vector<8x1xf32>
    %198 = math.exp %196 : vector<8x128xf32>
    %199 = vector.broadcast %197 : vector<8x1xf32> to vector<8x128xf32>
    %200 = arith.mulf %199, %198 : vector<8x128xf32>
    %201 = arith.addf %177, %200 : vector<8x128xf32>
    %cst_74 = arith.constant 0.000000e+00 : f32
    %202 = vector.broadcast %cst_74 : f32 to vector<8x128xf32>
    %203 = arith.cmpf oeq, %201, %202 : vector<8x128xf32>
    %cst_75 = arith.constant 2.22044605E-16 : f32
    %204 = vector.broadcast %cst_75 : f32 to vector<8x128xf32>
    %205 = arith.select %203, %204, %201 : vector<8x128xi1>, vector<8x128xf32>
    %206 = math.log %205 : vector<8x128xf32>
    %c0_76 = arith.constant 0 : index
    %c0_77 = arith.constant 0 : index
    %207 = vector.load %arg7[%c0_76, %c0_77] : memref<8x128xf32, #tpu.memory_space<vmem>>, vector<8x128xf32>
    tpu.vector_store %arg7[%c0_76, %c0_77], %206 {strides = array<i32>} : memref<8x128xf32, #tpu.memory_space<vmem>>, vector<8x128xf32>,
    return
  }
  func.func @transform_0(%arg0: i32) -> (i32, i32) {
    %c0_i32 = arith.constant 0 : i32
    %c0_i32_0 = arith.constant 0 : i32
    return %arg0, %c0_i32 : i32, i32
  }
  func.func @transform_1(%arg0: i32) -> (i32, i32) {
    %c0_i32 = arith.constant 0 : i32
    %c0_i32_0 = arith.constant 0 : i32
    return %arg0, %c0_i32 : i32, i32
  }
  func.func @transform_2(%arg0: i32) -> (i32, i32) {
    %c0_i32 = arith.constant 0 : i32
    %c0_i32_0 = arith.constant 0 : i32
    %c0_i32_1 = arith.constant 0 : i32
    return %c0_i32, %c0_i32_0 : i32, i32
  }
  func.func @transform_3(%arg0: i32) -> (i32, i32) {
    %c0_i32 = arith.constant 0 : i32
    %c0_i32_0 = arith.constant 0 : i32
    %c0_i32_1 = arith.constant 0 : i32
    return %c0_i32, %c0_i32_0 : i32, i32
  }
  func.func @transform_4(%arg0: i32) -> (i32, i32, i32) {
    %c0_i32 = arith.constant 0 : i32
    %c0_i32_0 = arith.constant 0 : i32
    %c0_i32_1 = arith.constant 0 : i32
    %c0_i32_2 = arith.constant 0 : i32
    return %c0_i32, %c0_i32_0, %c0_i32_1 : i32, i32, i32
  }
  func.func @transform_5(%arg0: i32) -> (i32, i32, i32) {
    %c0_i32 = arith.constant 0 : i32
    %c0_i32_0 = arith.constant 0 : i32
    %c0_i32_1 = arith.constant 0 : i32
    %c0_i32_2 = arith.constant 0 : i32
    return %c0_i32, %c0_i32_0, %c0_i32_1 : i32, i32, i32
  }
  func.func @transform_6(%arg0: i32) -> (i32, i32) {
    %c0_i32 = arith.constant 0 : i32
    %c0_i32_0 = arith.constant 0 : i32
    return %arg0, %c0_i32 : i32, i32
  }
}

</mosaic_0001>

<bundles_post_ra>
// kernel: tpu_custom_call.1
= control target key start
LH: loop header
LB: loop body
LE: loop exit
PB: predicated region body
PF: predicated region fallthrough
CT: control target
= control target key end

     0   :  { %11 = vsyncpa [#allocation3], 0  ;;  %s2322_s0 = inlined_call_operand.hbm [shape: bf16[8,32], index: 0, kind: input, shape index: {}]   ;;  %s2323_s1 = inlined_call_operand.hbm [shape: f32[8,8], index: 1, kind: input, shape index: {}]   ;;  %s2324_s2 = inlined_call_operand.hbm [shape: bf16[32,1024], index: 2, kind: input, shape index: {}]   ;;  %s2325_s3 = inlined_call_operand.hbm [shape: f32[1,1024], index: 3, kind: input, shape index: {}]   ;;  %s2326_s4 = inlined_call_operand.hbm [shape: bf16[8,128,128], index: 4, kind: input, shape index: {}]   ;;  %s2327_s5 = inlined_call_operand.vmem [shape: f32[8,1,128], index: 5, kind: input, shape index: {}]   ;;  %s2328_s6 = inlined_call_operand.hbm [shape: f32[8,128], index: 6, kind: output, shape index: {}]  }
   0x1   :  { %12 = vsyncpa [#allocation6], 0 }
   0x2   :  { %13 = vsyncpa [#allocation9], 0 }
   0x3   :  { %14 = vsyncpa [#allocation4], 0  ;;  %s2074_s21 = smov [#allocation5]   ;;  %s2075_s23 = smov [#allocation8]  }
   0x4   :  { %s31_s22 = sshll.u32 %s2074_s21, 4  ;;  %s53_s24 = sshll.u32 %s2075_s23, 4  ;;  %s32_s22 = int_to_ptr.vmem [resolvable:$true] %s31_s22  ;;  %s54_s24 = int_to_ptr.vmem [resolvable:$true] %s53_s24 }
   0x5   :  { %s1954_s25 = scalar_lea.vmem %s32_s22, 128  ;;  %p1959_p1 = scmp.lt.s32.totalorder %s32_s22, %s32_s22 }
   0x6   :  { %p1955_p0 = scmp.ne.s32.totalorder %s32_s22, %s1954_s25  ;;  %p1960_p2 = scmp.lt.s32.totalorder %s1954_s25, %s1954_s25 }
   0x8   :  { %p1961_p3 = por %p1960_p2, %p1959_p1 }
   0xa   :  { %p1962_p4 = pnand %p1961_p3, %p1955_p0 }
   0xc   :  { %1965 = shalt.err (!%p1962_p4)
}
   0xd   :  { %34 = dma.hbm_to_vmem [thread:$0]  %s2323_s1, 128, %s32_s22, [#allocation6]  }
   0xe   :  { %s1974_s28 = scalar_lea.vmem %s54_s24, 128  ;;  %p1979_p6 = scmp.lt.s32.totalorder %s54_s24, %s54_s24 }
   0xf   :  { %p1975_p5 = scmp.ne.s32.totalorder %s54_s24, %s1974_s28  ;;  %p1980_p7 = scmp.lt.s32.totalorder %s1974_s28, %s1974_s28 }
  0x11   :  { %p1981_p8 = por %p1980_p7, %p1979_p6 }
  0x13   :  { %p1982_p9 = pnand %p1981_p8, %p1975_p5 }
  0x15   :  { %1985 = shalt.err (!%p1982_p9)
}
  0x16   :  { %56 = dma.hbm_to_vmem [thread:$0]  %s2325_s3, 128, %s54_s24, [#allocation9]  }
  0x17   :  { %s2076_s7 = smov [#allocation2]   ;;  %s2077_s9 = smov [#allocation7]  }
  0x18   :  { %s21_s8 = sshll.u32 %s2076_s7, 4  ;;  %s40_s10 = sshll.u32 %s2077_s9, 4  ;;  %s22_s8 = int_to_ptr.vmem [resolvable:$true] %s21_s8  ;;  %s41_s10 = int_to_ptr.vmem [resolvable:$true] %s40_s10 }
  0x19   :  { %s1994_s11 = scalar_lea.vmem %s22_s8, 64  ;;  %p1999_p11 = scmp.lt.s32.totalorder %s22_s8, %s22_s8 }
  0x1a   :  { %p1995_p10 = scmp.ne.s32.totalorder %s22_s8, %s1994_s11  ;;  %p2000_p12 = scmp.lt.s32.totalorder %s1994_s11, %s1994_s11 }
  0x1c   :  { %p2001_p13 = por %p2000_p12, %p1999_p11 }
  0x1e   :  { %p2002_p0 = pnand %p2001_p13, %p1995_p10 }
  0x20   :  { %2005 = shalt.err (!%p2002_p0)
}
  0x21   :  { %24 = dma.hbm_to_vmem [thread:$0]  %s2322_s0, 64, %s22_s8, [#allocation3]  }
  0x22   :  { %s2014_s13 = scalar_lea.vmem %s41_s10, 2048  ;;  %p2019_p2 = scmp.lt.s32.totalorder %s41_s10, %s41_s10 }
  0x23   :  { %p2015_p1 = scmp.ne.s32.totalorder %s41_s10, %s2014_s13  ;;  %p2020_p3 = scmp.lt.s32.totalorder %s2014_s13, %s2014_s13 }
  0x25   :  { %p2021_p4 = por %p2020_p3, %p2019_p2 }
  0x27   :  { %p2022_p5 = pnand %p2021_p4, %p2015_p1 }
  0x29   :  { %2025 = shalt.err (!%p2022_p5)
}
  0x2a   :  { %s2078_s3 = smov 512   ;;  %s2079_s14 = smov 32  }
  0x2b   :  { %46 = dma.hbm_to_vmem [thread:$0]  %s2324_s2, 2048, %s41_s10, [#allocation6], %s2078_s3, %s2078_s3, %s2079_s14  }
  0x2c   :  { %s2080_s17 = smov [#allocation10]  }
  0x2d   :  { %s62_s18 = sshll.u32 %s2080_s17, 4  ;;  %s63_s18 = int_to_ptr.vmem [resolvable:$true] %s62_s18 }
  0x2e   :  { %s2034_s19 = scalar_lea.vmem %s63_s18, 8192  ;;  %p2039_p7 = scmp.lt.s32.totalorder %s63_s18, %s63_s18 }
  0x2f   :  { %p2035_p6 = scmp.ne.s32.totalorder %s63_s18, %s2034_s19  ;;  %p2040_p8 = scmp.lt.s32.totalorder %s2034_s19, %s2034_s19 }
  0x31   :  { %p2041_p9 = por %p2040_p8, %p2039_p7 }
  0x33   :  { %p2042_p10 = pnand %p2041_p9, %p2035_p6 }
  0x35   :  { %2045 = shalt.err (!%p2042_p10)
}
  0x36   :  { %s2081_s0 = smov 64   ;;  %s2082_s20 = smov 4  }
  0x37   :  { %68 = dma.hbm_to_vmem [thread:$0]  %s2326_s4, 8192, %s63_s18, [#allocation9], %s2081_s0, %s2081_s0, %s2082_s20  }
  0x38   :  { %2066 = dma.done.wait [#allocation3], 64  }
  0x39   :  { %2067 = vsyncadd [#allocation3], 4294967232 }
  0x3a   :  { %2068 = dma.done.wait [#allocation6], 2176  }
  0x3b   :  { %2069 = vsyncadd [#allocation6], 4294965120 }
  0x3c   :  { %2070 = dma.done.wait [#allocation9], 8320  }
  0x3d   :  { %2071 = vsyncadd [#allocation9], 4294958976  ;;  %v2083_v0 = vmov 0   ;;  %v97_v1 = vld [vmem:[#allocation7 + $0x40] sm:$0xff]  ;;  %v98_v7 = vld [vmem:[#allocation7 + $0x48] sm:$0xff]  ;;  %vm227_vm0 = vcmask 261120   ;;  %v107_v54 = vlaneseq }
  0x3e   :  { %263 = vmatprep.mubr.bf16.mxu0 %v2083_v0  ;;  %304 = vmatprep.mubr.bf16.mxu1 %v2083_v0  ;;  %v101_v2 = vld [vmem:[#allocation7 + $0x60] sm:$0xff]  ;;  %v102_v9 = vld [vmem:[#allocation7 + $0x68] sm:$0xff]  ;;  %v99_v15 = vld [vmem:[#allocation7 + $0x50] sm:$0xff]  ;;  %v2084_v35 = vmov 0.0   ;;  %vm2085_vm1 = vmmov 0   ;;  %v2086_v52 = vmov 1  }
  0x3f   :  { %1823 = vset.pattern.permute.xlu1 %v2083_v0  ;;  %v89_v3 = vld [vmem:[#allocation7] sm:$0xff]  ;;  %v1481_v4 = vcombine.high %v97_v1, %v101_v2  ;;  %v1480_v5 = vcombine.low %v97_v1, %v101_v2  ;;  %v90_v10 = vld [vmem:[#allocation7 + $0x8] sm:$0xff]  ;;  %v1483_v12 = vcombine.high %v98_v7, %v102_v9  ;;  %v1482_v13 = vcombine.low %v98_v7, %v102_v9  ;;  %v103_v16 = vld [vmem:[#allocation7 + $0x70] sm:$0xff] }
  0x40   :  { %v93_v6 = vld [vmem:[#allocation7 + $0x20] sm:$0xff]  ;;  %v94_v11 = vld [vmem:[#allocation7 + $0x28] sm:$0xff]  ;;  %v100_v18 = vld [vmem:[#allocation7 + $0x58] sm:$0xff]  ;;  %v1485_v20 = vcombine.high %v99_v15, %v103_v16  ;;  %v1484_v27 = vcombine.low %v99_v15, %v103_v16  ;;  %1824 = vset.pattern.permute.xlu0 %v2086_v52  ;;  %v2087_v53 = vmov 2   ;;  %v2175_v55 = vshrl.u32 %v107_v54, 7 }
  0x41   :  { %v1473_v8 = vcombine.high %v89_v3, %v93_v6  ;;  %243 = vmatprep.subr.bf16.mxu0 %v1481_v4  ;;  %v1475_v14 = vcombine.high %v90_v10, %v94_v11  ;;  %v1472_v17 = vcombine.low %v89_v3, %v93_v6  ;;  %v104_v19 = vld [vmem:[#allocation7 + $0x78] sm:$0xff]  ;;  %284 = vmatprep.subr.bf16.mxu1 %v1483_v12  ;;  %v91_v21 = vld [vmem:[#allocation7 + $0x10] sm:$0xff]  ;;  %v1832_v34 = vld [vmem:[#allocation10 + $0x38] sm:$0xff]  }
  0x42   :  { %244 = vmatpush1.bf16.msra.mxu0 %v1480_v5  ;;  %v87_v22 = vld [vmem:[#allocation2] sm:$0xf]  ;;  %285 = vmatpush1.bf16.msra.mxu1 %v1482_v13  ;;  %v1474_v23 = vcombine.low %v90_v10, %v94_v11  ;;  %v1487_v25 = vcombine.high %v100_v18, %v104_v19  ;;  %v92_v26 = vld [vmem:[#allocation7 + $0x18] sm:$0xff]  ;;  %v1486_v30 = vcombine.low %v100_v18, %v104_v19  ;;  %v1833_v36 = vld [vmem:[#allocation10 + $0x78] sm:$0xff]   ;;  %v109_v56 = vsub.s32 0, %v2175_v55 }
  0x43   :  { %245 = vmatprep.subr.bf16.mxu0 %v1473_v8  ;;  %v95_v24 = vld [vmem:[#allocation7 + $0x30] sm:$0xff]  ;;  %286 = vmatprep.subr.bf16.mxu1 %v1475_v14  ;;  %v96_v28 = vld [vmem:[#allocation7 + $0x38] sm:$0xff]  ;;  %v1838_v41 = vld [vmem:[#allocation10 + $0x20] sm:$0xff]   ;;  %v113_v58 = vsub.s32 1, %v2175_v55 }
  0x44   :  { %v1477_v29 = vcombine.high %v91_v21, %v95_v24  ;;  %v1479_v31 = vcombine.high %v92_v26, %v96_v28  ;;  %v1476_v32 = vcombine.low %v91_v21, %v95_v24  ;;  %v1478_v33 = vcombine.low %v92_v26, %v96_v28  ;;  %v1834_v37 = vld [vmem:[#allocation10 + $0x30] sm:$0xff]   ;;  %v1836_v39 = vld [vmem:[#allocation10 + $0x28] sm:$0xff]   ;;  %v1839_v42 = vld [vmem:[#allocation10 + $0x60] sm:$0xff]  }
  0x45   :  { %v1835_v38 = vld [vmem:[#allocation10 + $0x70] sm:$0xff]   ;;  %v1837_v40 = vld [vmem:[#allocation10 + $0x68] sm:$0xff]   ;;  %v1840_v43 = vld [vmem:[#allocation10 + $0x18] sm:$0xff]  }
  0x46   :  { %246 = vmatpush1.bf16.msra.mxu0 %v1472_v17  ;;  %287 = vmatpush1.bf16.msra.mxu1 %v1474_v23  ;;  %v1841_v44 = vld [vmem:[#allocation10 + $0x58] sm:$0xff]   ;;  %v1842_v45 = vld [vmem:[#allocation10 + $0x10] sm:$0xff]   ;;  %v1844_v47 = vld [vmem:[#allocation10 + $0x8] sm:$0xff]  }
  0x47   :  { %325 = vmatprep.subr.bf16.mxu0 %v1485_v20  ;;  %366 = vmatprep.subr.bf16.mxu1 %v1487_v25  ;;  %v1843_v46 = vld [vmem:[#allocation10 + $0x50] sm:$0xff]   ;;  %v1845_v48 = vld [vmem:[#allocation10 + $0x48] sm:$0xff]   ;;  %v1846_v49 = vld [vmem:[#allocation10] sm:$0xff]  }
  0x48   :  { %v1847_v50 = vld [vmem:[#allocation10 + $0x40] sm:$0xff]   ;;  %v2170_v51 = vld [vmem:[#allocation5] sm:$0xff]  ;;  %v2178_v57 = vld [vmem:[#allocation8] sm:$0xff] }
  0x49   :  { %1488 = vmatmul.mubr.msk.bf16.vlgmr.msra.gmra.mxu0 %vm227_vm0, %v87_v22  ;;  %1489 = vmatmul.mubr.msk.bf16.vlgmr.msra.gmra.mxu1 %vm227_vm0, %v87_v22  ;;  %v110_v59 = vrot.slane %v2178_v57, %v109_v56  ;;  %v114_v60 = vrot.slane %v2178_v57, %v113_v58  ;;  %v1848_v4 = vld [vmem:[#allocation10 + $0xb8] sm:$0xff]   ;;  %v1850_v12 = vld [vmem:[#allocation10 + $0xb0] sm:$0xff]   ;;  %v1852_v18 = vld [vmem:[#allocation10 + $0xa8] sm:$0xff]   ;;  %v125_v56 = vsub.s32 4, %v2175_v55 }
  0x4a   :  { %326 = vmatpush1.bf16.msra.mxu0 %v1484_v27  ;;  %345 = vmatprep.mubr.bf16.mxu0 %v2083_v0  ;;  %v1849_v9 = vld [vmem:[#allocation10 + $0xf8] sm:$0xff]   ;;  %v1851_v15 = vld [vmem:[#allocation10 + $0xf0] sm:$0xff]   ;;  %v1853_v21 = vld [vmem:[#allocation10 + $0xe8] sm:$0xff]   ;;  %v117_v27 = vsub.s32 2, %v2175_v55 }
  0x4b   :  { %327 = vmatprep.subr.bf16.mxu0 %v1477_v29  ;;  %367 = vmatpush1.bf16.msra.mxu1 %v1486_v30  ;;  %v1854_v24 = vld [vmem:[#allocation10 + $0xa0] sm:$0xff]   ;;  %v1856_v28 = vld [vmem:[#allocation10 + $0x98] sm:$0xff]   ;;  %v121_v29 = vsub.s32 3, %v2175_v55  ;;  %v1869_v52 = vld [vmem:[#allocation10 + $0x168] sm:$0xff]  }
  0x4c   :  { %386 = vmatprep.mubr.bf16.mxu1 %v2083_v0  ;;  %368 = vmatprep.subr.bf16.mxu1 %v1479_v31  ;;  %v1855_v26 = vld [vmem:[#allocation10 + $0xe0] sm:$0xff]   ;;  %v1857_v30 = vld [vmem:[#allocation10 + $0xd8] sm:$0xff]   ;;  %v118_v31 = vrot.slane %v2178_v57, %v117_v27 }
  0x4d   :  { %528 = vperm.xlu1 %1823, %v2170_v51   ;;  %659 = vperm.xlu0 %1824, %v2170_v51   ;;  %v1871_v54 = vld [vmem:[#allocation10 + $0x160] sm:$0xff]   ;;  %v1872_v58 = vld [vmem:[#allocation10 + $0x118] sm:$0xff]  }
  0x4e   :  { %328 = vmatpush1.bf16.msra.mxu0 %v1476_v32  ;;  %v1858_v32 = vld [vmem:[#allocation10 + $0x90] sm:$0xff]  }
  0x4f   :  { %1643 = vmatprep.subr.bf16.mxu0 %v2084_v35  ;;  %369 = vmatpush1.bf16.msra.mxu1 %v1478_v33  ;;  %v122_v33 = vrot.slane %v2178_v57, %v121_v29 }
  0x50   :  { %1663 = vmatprep.subr.bf16.mxu1 %v2084_v35 }
  0x51   :  { %1490 = vmatmul.mubr.msk.bf16.vlgmr.msra.gmra.mxu0 %vm227_vm0, %v87_v22  ;;  %1825 = vset.pattern.permute.xlu1 %v2087_v53  ;;  %v1870_v53 = vld [vmem:[#allocation10 + $0x120] sm:$0xff]  }
  0x52   :  { %1644 = vmatpush3.bf16.msra.mxu0 %v1832_v34  ;;  %1491 = vmatmul.mubr.msk.bf16.vlgmr.msra.gmra.mxu1 %vm227_vm0, %v87_v22  ;;  %v1859_v34 = vld [vmem:[#allocation10 + $0xd0] sm:$0xff]  }
  0x53   :  { %1645 = vmatprep.subr.bf16.mxu0 %v2084_v35  ;;  %1664 = vmatpush3.bf16.msra.mxu1 %v1833_v36 }
  0x54   :  { %1665 = vmatprep.subr.bf16.mxu1 %v2084_v35  ;;  %1659 = vmatprep.mubr.msk.bf16.mxu0 %vm2085_vm1, %v2084_v35 }
  0x55   :  { %1679 = vmatprep.mubr.msk.bf16.mxu1 %vm2085_vm1, %v2084_v35  ;;  %790 = vperm.xlu1 %1825, %v2170_v51  }
  0x56   :  { %1646 = vmatpush3.bf16.msra.mxu0 %v1834_v37  ;;  %v1860_v37 = vld [vmem:[#allocation10 + $0x88] sm:$0xff]  }
  0x57   :  { %1647 = vmatprep.subr.bf16.mxu0 %v2084_v35  ;;  %1666 = vmatpush3.bf16.msra.mxu1 %v1835_v38 }
  0x58   :  { %1667 = vmatprep.subr.bf16.mxu1 %v2084_v35 }
  0x5a   :  { %1648 = vmatpush3.bf16.msra.mxu0 %v1836_v39  ;;  %v1861_v39 = vld [vmem:[#allocation10 + $0xc8] sm:$0xff]  }
  0x5b   :  { %1649 = vmatprep.subr.bf16.mxu0 %v2084_v35  ;;  %1668 = vmatpush3.bf16.msra.mxu1 %v1837_v40 }
  0x5c   :  { %1669 = vmatprep.subr.bf16.mxu1 %v2084_v35 }
  0x5e   :  { %1650 = vmatpush3.bf16.msra.mxu0 %v1838_v41  ;;  %v1862_v41 = vld [vmem:[#allocation10 + $0x80] sm:$0xff]  }
  0x5f   :  { %1651 = vmatprep.subr.bf16.mxu0 %v2084_v35  ;;  %1670 = vmatpush3.bf16.msra.mxu1 %v1839_v42 }
  0x60   :  { %1671 = vmatprep.subr.bf16.mxu1 %v2084_v35 }
  0x62   :  { %1652 = vmatpush3.bf16.msra.mxu0 %v1840_v43  ;;  %v1863_v43 = vld [vmem:[#allocation10 + $0xc0] sm:$0xff]  }
  0x63   :  { %1653 = vmatprep.subr.bf16.mxu0 %v2084_v35  ;;  %1672 = vmatpush3.bf16.msra.mxu1 %v1841_v44 }
  0x64   :  { %1673 = vmatprep.subr.bf16.mxu1 %v2084_v35 }
  0x66   :  { %1654 = vmatpush3.bf16.msra.mxu0 %v1842_v45  ;;  %v1864_v45 = vld [vmem:[#allocation10 + $0x138] sm:$0xff]  }
  0x67   :  { %1655 = vmatprep.subr.bf16.mxu0 %v2084_v35  ;;  %1674 = vmatpush3.bf16.msra.mxu1 %v1843_v46 }
  0x68   :  { %1675 = vmatprep.subr.bf16.mxu1 %v2084_v35 }
  0x6a   :  { %1656 = vmatpush3.bf16.msra.mxu0 %v1844_v47  ;;  %v1865_v47 = vld [vmem:[#allocation10 + $0x178] sm:$0xff]  }
  0x6b   :  { %1657 = vmatprep.subr.bf16.mxu0 %v2084_v35  ;;  %1676 = vmatpush3.bf16.msra.mxu1 %v1845_v48  ;;  %v1866_v48 = vld [vmem:[#allocation10 + $0x130] sm:$0xff]  }
  0x6c   :  { %1677 = vmatprep.subr.bf16.mxu1 %v2084_v35 }
  0x6e   :  { %1658 = vmatpush3.bf16.msra.mxu0 %v1846_v49  ;;  %v1867_v49 = vld [vmem:[#allocation10 + $0x170] sm:$0xff]  }
  0x6f   :  { %1683 = vmatprep.subr.bf16.mxu0 %v2084_v35  ;;  %1678 = vmatpush3.bf16.msra.mxu1 %v1847_v50  ;;  %v1868_v50 = vld [vmem:[#allocation10 + $0x128] sm:$0xff]  }
  0x70   :  { %1703 = vmatprep.subr.bf16.mxu1 %v2084_v35 }
 0x109   :  { %v265_v61 = vpop.f32.mrf.mxu0  ;;  %v306_v0 = vpop.f32.mrf.mxu1 }
 0x10a   :  { %v266_v62 = vadd.f32 %v265_v61, %v110_v59  ;;  %v307_v36 = vadd.f32 %v306_v0, %v118_v31  ;;  %v1873_v59 = vld [vmem:[#allocation10 + $0x158] sm:$0xff]   ;;  %v129_v61 = vsub.s32 5, %v2175_v55  ;;  %v1894_v31 = vld [vmem:[#allocation10 + $0x1c8] sm:$0xff]  }
 0x10b   :  { %v267_v63 = vpop.f32.mrf.mxu0  ;;  %v308_v5 = vpop.f32.mrf.mxu1 }
 0x10c   :  { %v395_v1 = vmax.f32 %v266_v62, 0.0  ;;  %v268_v2 = vadd.f32 %v267_v63, %v114_v60  ;;  %v309_v38 = vadd.f32 %v308_v5, %v122_v33  ;;  %v397_v40 = vmax.f32 %v307_v36, 0.0  ;;  %v1874_v62 = vld [vmem:[#allocation10 + $0x110] sm:$0xff]   ;;  %v1893_v33 = vld [vmem:[#allocation10 + $0x180] sm:$0xff]  }
 0x10d   :  { %v269_v3 = vpop.f32.mrf.mxu0  ;;  %v310_v10 = vpop.f32.mrf.mxu1  ;;  %v126_v60 = vrot.slane %v2178_v57, %v125_v56  ;;  %v1875_v63 = vld [vmem:[#allocation10 + $0x150] sm:$0xff]  }
 0x10e   :  { %v403_v6 = vpack.c.bf16 %v395_v1, %v395_v1  ;;  %v396_v7 = vmax.f32 %v268_v2, 0.0  ;;  %v398_v42 = vmax.f32 %v309_v38, 0.0  ;;  %v664_v44 = vpack.c.bf16 %v397_v40, %v397_v40  ;;  %v1876_v2 = vld [vmem:[#allocation10 + $0x108] sm:$0xff]   ;;  %v1880_v10 = vld [vmem:[#allocation10 + $0x1b8] sm:$0xff]  }
 0x10f   :  { %v270_v8 = vpop.f32.mrf.mxu0  ;;  %v311_v13 = vpop.f32.mrf.mxu1  ;;  %v130_v1 = vrot.slane %v2178_v57, %v129_v61  ;;  %v1877_v3 = vld [vmem:[#allocation10 + $0x148] sm:$0xff]  }
 0x110   :  { %v533_v11 = vpack.c.bf16 %v396_v7, %v396_v7  ;;  %1660 = vmatmul.mubr.bf16.vlgmr.msra.gmra.mxu0 %v403_v6  ;;  %v795_v46 = vpack.c.bf16 %v398_v42, %v398_v42  ;;  %v1878_v6 = vld [vmem:[#allocation10 + $0x100] sm:$0xff]   ;;  %v1881_v13 = vld [vmem:[#allocation10 + $0x1b0] sm:$0xff]  }
 0x111   :  { %1684 = vmatpush3.bf16.msra.mxu0 %v1848_v4  ;;  %1699 = vmatprep.mubr.msk.bf16.mxu0 %vm2085_vm1, %v2084_v35  ;;  %v2185_v14 = vpop.f32.mrf.mxu0  ;;  %v1879_v7 = vld [vmem:[#allocation10 + $0x140] sm:$0xff]  }
 0x112   :  { %1680 = vmatmul.mubr.bf16.vlgmr.msra.gmra.mxu1 %v533_v11  ;;  %1685 = vmatprep.subr.bf16.mxu0 %v2084_v35  ;;  %v2192_v17 = vpop.f32.mrf.mxu1  ;;  %v348_v0 = vadd.f32 %v2185_v14, %v126_v60  ;;  %v1882_v11 = vld [vmem:[#allocation10 + $0x1f8] sm:$0xff]   ;;  %v1884_v14 = vld [vmem:[#allocation10 + $0x1f0] sm:$0xff]  }
 0x113   :  { %1704 = vmatpush3.bf16.msra.mxu1 %v1849_v9  ;;  %1719 = vmatprep.mubr.msk.bf16.mxu1 %vm2085_vm1, %v2084_v35  ;;  %v2190_v16 = vpop.f32.mrf.mxu0 }
 0x114   :  { %1705 = vmatprep.subr.bf16.mxu1 %v2084_v35  ;;  %v2195_v20 = vpop.f32.mrf.mxu1  ;;  %v399_v4 = vmax.f32 %v348_v0, 0.0  ;;  %v350_v5 = vadd.f32 %v2190_v16, %v130_v1  ;;  %v1886_v16 = vld [vmem:[#allocation10 + $0x1e8] sm:$0xff]  }
 0x115   :  { %1686 = vmatpush3.bf16.msra.mxu0 %v1850_v12  ;;  %v351_v19 = vpop.f32.mrf.mxu0  ;;  %v1532_v0 = vld [vmem:[%s2327_s5 + $0x4] ss:$0 sm:$0xff] }
 0x116   :  { %1687 = vmatprep.subr.bf16.mxu0 %v2084_v35  ;;  %v392_v23 = vpop.f32.mrf.mxu1  ;;  %v926_v8 = vpack.c.bf16 %v399_v4, %v399_v4  ;;  %v400_v9 = vmax.f32 %v350_v5, 0.0  ;;  %v1888_v19 = vld [vmem:[#allocation10 + $0x1e0] sm:$0xff]  }
 0x117   :  { %1706 = vmatpush3.bf16.msra.mxu1 %v1851_v15  ;;  %v352_v22 = vpop.f32.mrf.mxu0  ;;  %v1883_v15 = vld [vmem:[#allocation10 + $0x1a8] sm:$0xff]   ;;  %v137_v23 = vsub.s32 7, %v2175_v55 }
 0x118   :  { %1707 = vmatprep.subr.bf16.mxu1 %v2084_v35  ;;  %v393_v25 = vpop.f32.mrf.mxu1  ;;  %v1057_v12 = vpack.c.bf16 %v400_v9, %v400_v9  ;;  %v1887_v22 = vld [vmem:[#allocation10 + $0x198] sm:$0xff]  }
 0x119   :  { %1688 = vmatpush3.bf16.msra.mxu0 %v1852_v18  ;;  %v1885_v18 = vld [vmem:[#allocation10 + $0x1a0] sm:$0xff]   ;;  %v138_v27 = vrot.slane %v2178_v57, %v137_v23 }
 0x11a   :  { %1689 = vmatprep.subr.bf16.mxu0 %v2084_v35 }
 0x11b   :  { %1708 = vmatpush3.bf16.msra.mxu1 %v1853_v21  ;;  %v133_v21 = vsub.s32 6, %v2175_v55  ;;  %v1891_v55 = vld [vmem:[#allocation10 + $0x188] sm:$0xff]  }
 0x11c   :  { %1709 = vmatprep.subr.bf16.mxu1 %v2084_v35 }
 0x11d   :  { %1690 = vmatpush3.bf16.msra.mxu0 %v1854_v24  ;;  %v1890_v24 = vld [vmem:[#allocation10 + $0x1d8] sm:$0xff]   ;;  %v134_v25 = vrot.slane %v2178_v57, %v133_v21 }
 0x11e   :  { %1691 = vmatprep.subr.bf16.mxu0 %v2084_v35 }
 0x11f   :  { %1710 = vmatpush3.bf16.msra.mxu1 %v1855_v26  ;;  %v1889_v26 = vld [vmem:[#allocation10 + $0x190] sm:$0xff]   ;;  %v389_v29 = vadd.f32 %v2192_v17, %v134_v25 }
 0x120   :  { %1711 = vmatprep.subr.bf16.mxu1 %v2084_v35 }
 0x121   :  { %1692 = vmatpush3.bf16.msra.mxu0 %v1856_v28  ;;  %v1892_v28 = vld [vmem:[#allocation10 + $0x1d0] sm:$0xff]  }
 0x122   :  { %1693 = vmatprep.subr.bf16.mxu0 %v2084_v35 }
 0x123   :  { %1712 = vmatpush3.bf16.msra.mxu1 %v1857_v30  ;;  %v391_v30 = vadd.f32 %v2195_v20, %v138_v27  ;;  %v2088_v20 = vmov 4   ;;  %v2297_v27 = vpop.permute.xlu1 %528 }
 0x124   :  { %1713 = vmatprep.subr.bf16.mxu1 %v2084_v35  ;;  %1827 = vset.pattern.permute.xlu0 %v2088_v20 }
 0x125   :  { %1694 = vmatpush3.bf16.msra.mxu0 %v1858_v32  ;;  %v401_v32 = vmax.f32 %v389_v29, 0.0  ;;  %v402_v57 = vmax.f32 %v391_v30, 0.0 }
 0x126   :  { %1695 = vmatprep.subr.bf16.mxu0 %v2084_v35 }
 0x127   :  { %1714 = vmatpush3.bf16.msra.mxu1 %v1859_v34  ;;  %v1895_v34 = vld [vmem:[#allocation10 + $0x1c0] sm:$0xff]   ;;  %v1188_v36 = vpack.c.bf16 %v401_v32, %v401_v32  ;;  %v1319_v17 = vpack.c.bf16 %v402_v57, %v402_v57  ;;  %v2301_v29 = vpop.permute.xlu1 %790 }
 0x128   :  { %1715 = vmatprep.subr.bf16.mxu1 %v2084_v35 }
 0x129   :  { %1696 = vmatpush3.bf16.msra.mxu0 %v1860_v37  ;;  %v1492_v37 = vld [vmem:[%s2327_s5] ss:$0 sm:$0xff] }
 0x12a   :  { %1697 = vmatprep.subr.bf16.mxu0 %v2084_v35 }
 0x12b   :  { %1716 = vmatpush3.bf16.msra.mxu1 %v1861_v39  ;;  %v1502_v39 = vld [vmem:[%s2327_s5 + $0x1] ss:$0 sm:$0xff] }
 0x12c   :  { %1717 = vmatprep.subr.bf16.mxu1 %v2084_v35 }
 0x12d   :  { %1698 = vmatpush3.bf16.msra.mxu0 %v1862_v41 }
 0x12e   :  { %1723 = vmatprep.subr.bf16.mxu0 %v2084_v35 }
 0x12f   :  { %1718 = vmatpush3.bf16.msra.mxu1 %v1863_v43 }
 0x130   :  { %1700 = vmatmul.mubr.bf16.vlgmr.msra.gmra.mxu0 %v664_v44  ;;  %1743 = vmatprep.subr.bf16.mxu1 %v2084_v35 }
 0x131   :  { %1724 = vmatpush3.bf16.msra.mxu0 %v1864_v45  ;;  %1739 = vmatprep.mubr.msk.bf16.mxu0 %vm2085_vm1, %v2084_v35 }
 0x132   :  { %1720 = vmatmul.mubr.bf16.vlgmr.msra.gmra.mxu1 %v795_v46  ;;  %1725 = vmatprep.subr.bf16.mxu0 %v2084_v35 }
 0x133   :  { %1744 = vmatpush3.bf16.msra.mxu1 %v1865_v47  ;;  %1759 = vmatprep.mubr.msk.bf16.mxu1 %vm2085_vm1, %v2084_v35 }
 0x134   :  { %1745 = vmatprep.subr.bf16.mxu1 %v2084_v35 }
 0x135   :  { %1726 = vmatpush3.bf16.msra.mxu0 %v1866_v48  ;;  %v2089_v48 = vmov 3  }
 0x136   :  { %1727 = vmatprep.subr.bf16.mxu0 %v2084_v35  ;;  %1826 = vset.pattern.permute.xlu1 %v2089_v48 }
 0x137   :  { %1746 = vmatpush3.bf16.msra.mxu1 %v1867_v49  ;;  %v1512_v49 = vld [vmem:[%s2327_s5 + $0x2] ss:$0 sm:$0xff] }
 0x138   :  { %1747 = vmatprep.subr.bf16.mxu1 %v2084_v35 }
 0x139   :  { %1728 = vmatpush3.bf16.msra.mxu0 %v1868_v50 }
 0x13a   :  { %1729 = vmatprep.subr.bf16.mxu0 %v2084_v35 }
 0x13b   :  { %1748 = vmatpush3.bf16.msra.mxu1 %v1869_v52  ;;  %v1522_v52 = vld [vmem:[%s2327_s5 + $0x3] ss:$0 sm:$0xff] }
 0x13c   :  { %1749 = vmatprep.subr.bf16.mxu1 %v2084_v35 }
 0x13d   :  { %1730 = vmatpush3.bf16.msra.mxu0 %v1870_v53 }
 0x13e   :  { %1731 = vmatprep.subr.bf16.mxu0 %v2084_v35 }
 0x13f   :  { %1750 = vmatpush3.bf16.msra.mxu1 %v1871_v54 }
 0x140   :  { %1751 = vmatprep.subr.bf16.mxu1 %v2084_v35 }
 0x141   :  { %1732 = vmatpush3.bf16.msra.mxu0 %v1872_v58 }
 0x142   :  { %1733 = vmatprep.subr.bf16.mxu0 %v2084_v35 }
 0x143   :  { %1752 = vmatpush3.bf16.msra.mxu1 %v1873_v59 }
 0x144   :  { %1753 = vmatprep.subr.bf16.mxu1 %v2084_v35 }
 0x145   :  { %1734 = vmatpush3.bf16.msra.mxu0 %v1874_v62 }
 0x146   :  { %1735 = vmatprep.subr.bf16.mxu0 %v2084_v35 }
 0x147   :  { %1754 = vmatpush3.bf16.msra.mxu1 %v1875_v63 }
 0x148   :  { %1755 = vmatprep.subr.bf16.mxu1 %v2084_v35 }
 0x149   :  { %1736 = vmatpush3.bf16.msra.mxu0 %v1876_v2  ;;  %v1542_v2 = vld [vmem:[%s2327_s5 + $0x5] ss:$0 sm:$0xff] }
 0x14a   :  { %1737 = vmatprep.subr.bf16.mxu0 %v2084_v35 }
 0x14b   :  { %1756 = vmatpush3.bf16.msra.mxu1 %v1877_v3 }
 0x14c   :  { %1757 = vmatprep.subr.bf16.mxu1 %v2084_v35 }
 0x14d   :  { %1738 = vmatpush3.bf16.msra.mxu0 %v1878_v6 }
 0x14e   :  { %1763 = vmatprep.subr.bf16.mxu0 %v2084_v35 }
 0x14f   :  { %1758 = vmatpush3.bf16.msra.mxu1 %v1879_v7 }
 0x150   :  { %1740 = vmatmul.mubr.bf16.vlgmr.msra.gmra.mxu0 %v926_v8  ;;  %1783 = vmatprep.subr.bf16.mxu1 %v2084_v35 }
 0x151   :  { %1764 = vmatpush3.bf16.msra.mxu0 %v1880_v10  ;;  %1779 = vmatprep.mubr.msk.bf16.mxu0 %vm2085_vm1, %v2084_v35 }
 0x152   :  { %1760 = vmatmul.mubr.bf16.vlgmr.msra.gmra.mxu1 %v1057_v12  ;;  %1765 = vmatprep.subr.bf16.mxu0 %v2084_v35  ;;  %v1552_v12 = vld [vmem:[%s2327_s5 + $0x6] ss:$0 sm:$0xff] }
 0x153   :  { %1784 = vmatpush3.bf16.msra.mxu1 %v1882_v11  ;;  %1799 = vmatprep.mubr.msk.bf16.mxu1 %vm2085_vm1, %v2084_v35 }
 0x154   :  { %1785 = vmatprep.subr.bf16.mxu1 %v2084_v35 }
 0x155   :  { %1766 = vmatpush3.bf16.msra.mxu0 %v1881_v13 }
 0x156   :  { %1767 = vmatprep.subr.bf16.mxu0 %v2084_v35 }
 0x157   :  { %1786 = vmatpush3.bf16.msra.mxu1 %v1884_v14  ;;  %v1562_v14 = vld [vmem:[%s2327_s5 + $0x7] ss:$0 sm:$0xff]  ;;  %s2093_s5 = smov [#allocation11]  }
 0x158   :  { %1787 = vmatprep.subr.bf16.mxu1 %v2084_v35  ;;  %s1461_s12 = sshll.u32 %s2093_s5, 4  ;;  %s1462_s12 = int_to_ptr.vmem [resolvable:$true] %s1461_s12 }
 0x159   :  { %1768 = vmatpush3.bf16.msra.mxu0 %v1883_v15  ;;  %s2046_s13 = scalar_lea.vmem %s1462_s12, 128  ;;  %p2051_p12 = scmp.lt.s32.totalorder %s1462_s12, %s1462_s12 }
 0x15a   :  { %1769 = vmatprep.subr.bf16.mxu0 %v2084_v35  ;;  %p2047_p11 = scmp.ne.s32.totalorder %s1462_s12, %s2046_s13  ;;  %p2052_p13 = scmp.lt.s32.totalorder %s2046_s13, %s2046_s13 }
 0x15b   :  { %1788 = vmatpush3.bf16.msra.mxu1 %v1886_v16 }
 0x15c   :  { %1789 = vmatprep.subr.bf16.mxu1 %v2084_v35  ;;  %p2053_p0 = por %p2052_p13, %p2051_p12 }
 0x15d   :  { %1770 = vmatpush3.bf16.msra.mxu0 %v1885_v18 }
 0x15e   :  { %1771 = vmatprep.subr.bf16.mxu0 %v2084_v35  ;;  %p2054_p1 = pnand %p2053_p0, %p2047_p11 }
 0x15f   :  { %1790 = vmatpush3.bf16.msra.mxu1 %v1888_v19 }
 0x160   :  { %1791 = vmatprep.subr.bf16.mxu1 %v2084_v35 }
 0x161   :  { %1772 = vmatpush3.bf16.msra.mxu0 %v1887_v22 }
 0x162   :  { %1773 = vmatprep.subr.bf16.mxu0 %v2084_v35 }
 0x163   :  { %1792 = vmatpush3.bf16.msra.mxu1 %v1890_v24 }
 0x164   :  { %1793 = vmatprep.subr.bf16.mxu1 %v2084_v35 }
 0x165   :  { %1774 = vmatpush3.bf16.msra.mxu0 %v1889_v26  ;;  %v2090_v26 = vmov 5  }
 0x166   :  { %1775 = vmatprep.subr.bf16.mxu0 %v2084_v35 }
 0x167   :  { %1794 = vmatpush3.bf16.msra.mxu1 %v1892_v28  ;;  %v2299_v28 = vpop.permute.xlu0 %659 }
 0x168   :  { %1795 = vmatprep.subr.bf16.mxu1 %v2084_v35 }
 0x169   :  { %1776 = vmatpush3.bf16.msra.mxu0 %v1891_v55 }
 0x16a   :  { %1777 = vmatprep.subr.bf16.mxu0 %v2084_v35 }
 0x16b   :  { %1796 = vmatpush3.bf16.msra.mxu1 %v1894_v31 }
 0x16c   :  { %1797 = vmatprep.subr.bf16.mxu1 %v2084_v35 }
 0x16d   :  { %1778 = vmatpush3.bf16.msra.mxu0 %v1893_v33 }
 0x16f   :  { %1798 = vmatpush3.bf16.msra.mxu1 %v1895_v34 }
 0x170   :  { %1780 = vmatmul.mubr.bf16.vlgmr.msra.gmra.mxu0 %v1188_v36 }
 0x172   :  { %1800 = vmatmul.mubr.bf16.vlgmr.msra.gmra.mxu1 %v1319_v17 }
 0x1d0   :  { %v509_v38 = vpop.f32.mrf.mxu0 }
 0x1d1   :  { %v2271_v40 = vadd.f32 %v1492_v37, %v509_v38 }
 0x1d2   :  { %v1661_v41 = vpop.f32.mrf.mxu0  ;;  %v641_v35 = vpop.f32.mrf.mxu1 }
 0x1d3   :  { %v2273_v42 = vadd.f32 %v1502_v39, %v641_v35  ;;  %515 = vmax.xlane.f32.xlu0 %v2271_v40 }
 0x1d4   :  { %v512_v43 = vpop.f32.mrf.mxu0  ;;  %v1681_v44 = vpop.f32.mrf.mxu1 }
 0x1d5   :  { %647 = vmax.xlane.f32.xlu1 %v2273_v42 }
 0x1d6   :  { %v1662_v45 = vpop.f32.mrf.mxu0  ;;  %v644_v46 = vpop.f32.mrf.mxu1 }
 0x1d8   :  { %v1682_v47 = vpop.f32.mrf.mxu1 }
 0x1f0   :  { %v772_v50 = vpop.f32.mrf.mxu0 }
 0x1f1   :  { %v773_v53 = vadd.f32 %v1512_v49, %v772_v50 }
 0x1f2   :  { %v1701_v54 = vpop.f32.mrf.mxu0  ;;  %v903_v56 = vpop.f32.mrf.mxu1 }
 0x1f3   :  { %v904_v58 = vadd.f32 %v1522_v52, %v903_v56  ;;  %778 = vmax.xlane.f32.xlu1 %v773_v53  ;;  %v2092_v56 = vmov 6  }
 0x1f4   :  { %v775_v59 = vpop.f32.mrf.mxu0  ;;  %v1721_v60 = vpop.f32.mrf.mxu1 }
 0x1f5   :  { %909 = vmax.xlane.f32.xlu0 %v904_v58 }
 0x1f6   :  { %v1702_v61 = vpop.f32.mrf.mxu0  ;;  %v906_v62 = vpop.f32.mrf.mxu1 }
 0x1f8   :  { %v1722_v63 = vpop.f32.mrf.mxu1 }
 0x210   :  { %v1034_v1 = vpop.f32.mrf.mxu0 }
 0x211   :  { %v1035_v3 = vadd.f32 %v1532_v0, %v1034_v1 }
 0x212   :  { %v1741_v4 = vpop.f32.mrf.mxu0  ;;  %v1165_v5 = vpop.f32.mrf.mxu1 }
 0x213   :  { %v1166_v6 = vadd.f32 %v1542_v2, %v1165_v5  ;;  %1040 = vmax.xlane.f32.xlu1 %v1035_v3 }
 0x214   :  { %v1037_v7 = vpop.f32.mrf.mxu0  ;;  %v1761_v8 = vpop.f32.mrf.mxu1 }
 0x215   :  { %1171 = vmax.xlane.f32.xlu0 %v1166_v6 }
 0x216   :  { %v1742_v9 = vpop.f32.mrf.mxu0  ;;  %v1168_v10 = vpop.f32.mrf.mxu1 }
 0x218   :  { %v1762_v11 = vpop.f32.mrf.mxu1 }
 0x224   :  { %921 = vperm.xlu1 %1826, %v2170_v51  }
 0x228   :  { %1828 = vset.pattern.permute.xlu1 %v2090_v26 }
 0x230   :  { %v1296_v13 = vpop.f32.mrf.mxu0 }
 0x231   :  { %v1297_v15 = vadd.f32 %v1552_v12, %v1296_v13 }
 0x232   :  { %v1427_v16 = vpop.f32.mrf.mxu1  ;;  %v1781_v18 = vpop.f32.mrf.mxu0 }
 0x233   :  { %1302 = vmax.xlane.f32.xlu0 %v1297_v15  ;;  %v1428_v19 = vadd.f32 %v1562_v14, %v1427_v16 }
 0x234   :  { %v1801_v21 = vpop.f32.mrf.mxu1  ;;  %v1299_v22 = vpop.f32.mrf.mxu0 }
 0x236   :  { %v1430_v23 = vpop.f32.mrf.mxu1  ;;  %v1782_v24 = vpop.f32.mrf.mxu0 }
 0x237   :  { %1433 = vmax.xlane.f32.xlu0 %v1428_v19 }
 0x238   :  { %v1802_v25 = vpop.f32.mrf.mxu1 }
 0x24d   :  { %1052 = vperm.xlu0 %1827, %v2170_v51  }
 0x25c   :  { %v516_v55 = vpop.xlane.xlu0 %515 }
 0x25d   :  { %v517_v30 = vsub.f32 %v2271_v40, %v516_v55 }
 0x25e   :  { %v648_v31 = vpop.xlane.xlu1 %647 }
 0x25f   :  { %v518_v32 = vmul.f32 1.442695, %v517_v30  ;;  %v649_v33 = vsub.f32 %v2273_v42, %v648_v31  ;;  %v2091_v42 = vmov 7  }
 0x260   :  { %1831 = vset.pattern.permute.xlu0 %v2091_v42 }
 0x261   :  { %1896 = vpow2.f32 %v518_v32  ;;  %v650_v57 = vmul.f32 1.442695, %v649_v33 }
 0x263   :  { %1898 = vpow2.f32 %v650_v57 }
 0x26e   :  { %v2305_v34 = vpop.eup %1896 }
 0x26f   :  { %520 = vadd.xlane.f32.xlu0 %v2305_v34 }
 0x270   :  { %v2308_v36 = vpop.eup %1898 }
 0x273   :  { %652 = vadd.xlane.f32.xlu0 %v2308_v36 }
 0x27c   :  { %v779_v17 = vpop.xlane.xlu1 %778 }
 0x27d   :  { %v780_v20 = vsub.f32 %v773_v53, %v779_v17 }
 0x27e   :  { %v910_v37 = vpop.xlane.xlu0 %909 }
 0x27f   :  { %v781_v38 = vmul.f32 1.442695, %v780_v20  ;;  %v911_v39 = vsub.f32 %v904_v58, %v910_v37 }
 0x281   :  { %1900 = vpow2.f32 %v781_v38  ;;  %v912_v40 = vmul.f32 1.442695, %v911_v39 }
 0x283   :  { %1902 = vpow2.f32 %v912_v40 }
 0x28e   :  { %v1901_v41 = vpop.eup %1900 }
 0x28f   :  { %783 = vadd.xlane.f32.xlu1 %v1901_v41 }
 0x290   :  { %v1903_v35 = vpop.eup %1902 }
 0x291   :  { %914 = vadd.xlane.f32.xlu0 %v1903_v35 }
 0x29c   :  { %v1041_v43 = vpop.xlane.xlu1 %1040 }
 0x29d   :  { %v1042_v44 = vsub.f32 %v1035_v3, %v1041_v43 }
 0x29e   :  { %v1172_v45 = vpop.xlane.xlu0 %1171 }
 0x29f   :  { %v1043_v46 = vmul.f32 1.442695, %v1042_v44  ;;  %v1173_v47 = vsub.f32 %v1166_v6, %v1172_v45 }
 0x2a0   :  { %v922_v1 = vpop.permute.xlu1 %921 }
 0x2a1   :  { %1904 = vpow2.f32 %v1043_v46  ;;  %v1174_v48 = vmul.f32 1.442695, %v1173_v47 }
 0x2a3   :  { %1906 = vpow2.f32 %v1174_v48 }
 0x2ae   :  { %v1905_v49 = vpop.eup %1904 }
 0x2af   :  { %1045 = vadd.xlane.f32.xlu0 %v1905_v49 }
 0x2b0   :  { %v1907_v50 = vpop.eup %1906 }
 0x2b1   :  { %1176 = vadd.xlane.f32.xlu1 %v1907_v50 }
 0x2bc   :  { %v1303_v52 = vpop.xlane.xlu0 %1302 }
 0x2bd   :  { %v1304_v53 = vsub.f32 %v1297_v15, %v1303_v52 }
 0x2bf   :  { %v1305_v54 = vmul.f32 1.442695, %v1304_v53 }
 0x2c0   :  { %v1434_v58 = vpop.xlane.xlu0 %1433 }
 0x2c1   :  { %1908 = vpow2.f32 %v1305_v54  ;;  %v1435_v60 = vsub.f32 %v1428_v19, %v1434_v58 }
 0x2c2   :  { %1183 = vperm.xlu1 %1828, %v2170_v51  }
 0x2c3   :  { %v1436_v61 = vmul.f32 1.442695, %v1435_v60 }
 0x2c5   :  { %1910 = vpow2.f32 %v1436_v61 }
 0x2c6   :  { %1829 = vset.pattern.permute.xlu1 %v2092_v56 }
 0x2c8   :  { %v1053_v63 = vpop.permute.xlu0 %1052 }
 0x2ce   :  { %v1909_v59 = vpop.eup %1908 }
 0x2cf   :  { %1307 = vadd.xlane.f32.xlu0 %v1909_v59 }
 0x2d2   :  { %v1911_v62 = vpop.eup %1910 }
 0x2e6   :  { %1438 = vadd.xlane.f32.xlu1 %v1911_v62 }
 0x2f7   :  { %1314 = vperm.xlu1 %1829, %v2170_v51  }
 0x2f8   :  { %v521_v0 = vpop.xlane.xlu0 %520 }
 0x2f9   :  { %1912 = vrcp.f32 %v521_v0 }
 0x2fb   :  { %1830 = vset.pattern.permute.xlu1 %v2091_v42 }
 0x2fc   :  { %1445 = vperm.xlu1 %1830, %v2170_v51   ;;  %v653_v2 = vpop.xlane.xlu0 %652 }
 0x2fd   :  { %1914 = vrcp.f32 %v653_v2 }
 0x306   :  { %v1913_v8 = vpop.eup %1912 }
 0x307   :  { %v523_v51 = vmul.f32 %v1913_v8, %v2305_v34 }
 0x309   :  { %v524_v14 = vmul.f32 1.442695, %v523_v51 }
 0x30a   :  { %v1915_v9 = vpop.eup %1914 }
 0x30b   :  { %v655_v11 = vmul.f32 %v1915_v9, %v2308_v36 }
 0x30d   :  { %v656_v15 = vmul.f32 1.442695, %v655_v11 }
 0x318   :  { %v784_v3 = vpop.xlane.xlu1 %783 }
 0x319   :  { %1916 = vrcp.f32 %v784_v3 }
 0x31a   :  { %v915_v4 = vpop.xlane.xlu0 %914 }
 0x31b   :  { %1918 = vrcp.f32 %v915_v4 }
 0x326   :  { %v1917_v10 = vpop.eup %1916 }
 0x327   :  { %v786_v12 = vmul.f32 %v1917_v10, %v1901_v41 }
 0x328   :  { %v1919_v13 = vpop.eup %1918 }
 0x329   :  { %v787_v18 = vmul.f32 1.442695, %v786_v12  ;;  %v917_v21 = vmul.f32 %v1919_v13, %v1903_v35 }
 0x32b   :  { %v918_v25 = vmul.f32 1.442695, %v917_v21 }
 0x338   :  { %v1046_v5 = vpop.xlane.xlu0 %1045 }
 0x339   :  { %1920 = vrcp.f32 %v1046_v5 }
 0x33a   :  { %v1177_v6 = vpop.xlane.xlu1 %1176 }
 0x33b   :  { %1922 = vrcp.f32 %v1177_v6 }
 0x33e   :  { %v1184_v19 = vpop.permute.xlu1 %1183 }
 0x346   :  { %v1921_v16 = vpop.eup %1920 }
 0x347   :  { %v1048_v22 = vmul.f32 %v1921_v16, %v1905_v49 }
 0x348   :  { %v1923_v23 = vpop.eup %1922 }
 0x349   :  { %v1049_v55 = vmul.f32 1.442695, %v1048_v22  ;;  %v1179_v30 = vmul.f32 %v1923_v23, %v1907_v50 }
 0x34b   :  { %v1180_v32 = vmul.f32 1.442695, %v1179_v30 }
 0x358   :  { %v1308_v7 = vpop.xlane.xlu0 %1307 }
 0x359   :  { %1924 = vrcp.f32 %v1308_v7 }
 0x35a   :  { %1926 = vpow2.f32 %v524_v14 }
 0x35b   :  { %1928 = vpow2.f32 %v656_v15 }
 0x35c   :  { %1930 = vpow2.f32 %v787_v18 }
 0x366   :  { %v1925_v26 = vpop.eup %1924 }
 0x367   :  { %v1310_v31 = vmul.f32 %v1925_v26, %v1909_v59  ;;  %v1927_v57 = vpop.eup %1926 }
 0x368   :  { %v1929_v34 = vpop.eup %1928  ;;  %v531_v39 = vmul.f32 %v1927_v57, %v2297_v27 }
 0x369   :  { %v1311_v33 = vmul.f32 1.442695, %v1310_v31  ;;  %v1931_v36 = vpop.eup %1930  ;;  %v662_v20 = vmul.f32 %v1929_v34, %v2299_v28 }
 0x36a   :  { %v793_v38 = vmul.f32 %v1931_v36, %v2301_v29 }
 0x36b   :  { %v663_v35 = vadd.f32 %v662_v20, %v531_v39 }
 0x36d   :  { %v794_v43 = vadd.f32 %v793_v38, %v663_v35 }
 0x36f   :  { %v1439_v24 = vpop.xlane.xlu1 %1438 }
 0x370   :  { %1932 = vrcp.f32 %v1439_v24 }
 0x371   :  { %1934 = vpow2.f32 %v918_v25 }
 0x372   :  { %1936 = vpow2.f32 %v1049_v55 }
 0x373   :  { %1938 = vpow2.f32 %v1180_v32  ;;  %v1315_v49 = vpop.permute.xlu1 %1314 }
 0x374   :  { %1940 = vpow2.f32 %v1311_v33 }
 0x377   :  { %v1446_v53 = vpop.permute.xlu1 %1445 }
 0x37d   :  { %v1933_v17 = vpop.eup %1932 }
 0x37e   :  { %v1441_v37 = vmul.f32 %v1933_v17, %v1911_v62  ;;  %v1935_v41 = vpop.eup %1934 }
 0x37f   :  { %v1937_v42 = vpop.eup %1936  ;;  %v924_v44 = vmul.f32 %v1935_v41, %v922_v1 }
 0x380   :  { %v1442_v40 = vmul.f32 1.442695, %v1441_v37  ;;  %v1055_v45 = vmul.f32 %v1937_v42, %v1053_v63  ;;  %v1939_v46 = vpop.eup %1938 }
 0x381   :  { %v925_v47 = vadd.f32 %v924_v44, %v794_v43  ;;  %v1941_v48 = vpop.eup %1940  ;;  %v1186_v52 = vmul.f32 %v1939_v46, %v1184_v19 }
 0x382   :  { %1942 = vpow2.f32 %v1442_v40  ;;  %v1317_v28 = vmul.f32 %v1941_v48, %v1315_v49 }
 0x383   :  { %v1056_v50 = vadd.f32 %v1055_v45, %v925_v47 }
 0x385   :  { %v1187_v54 = vadd.f32 %v1186_v52, %v1056_v50 }
 0x387   :  { %v1318_v56 = vadd.f32 %v1317_v28, %v1187_v54 }
 0x38f   :  { %v1943_v29 = vpop.eup %1942 }
 0x390   :  { %v1448_v27 = vmul.f32 %v1943_v29, %v1446_v53 }
 0x392   :  { %v1449_v58 = vadd.f32 %v1448_v27, %v1318_v56 }
 0x394   :  { %vm1450_vm2 = vcmp.eq.f32.partialorder %v1449_v58, 0.0 }
 0x395   :  { %v1451_v59 = vsel %vm1450_vm2, 2.220446e-16, %v1449_v58 }
 0x396   :  { %1944 = vlog2.f32 %v1451_v59 }
 0x3a3   :  { %v1945_v60 = vpop.eup %1944 }
 0x3a4   :  { %v1453_v61 = vmul.f32 0.6931472, %v1945_v60 }
 0x3a6   :  { %1454 = vst [vmem:[#allocation11] sm:$0xff] %v1453_v61 }
 0x3a7   :  { %2057 = shalt.err (!%p2054_p1)
}
 0x3a8   :  { %1464 = dma.vmem_to_hbm [thread:$0]  %s1462_s12, 128, %s2328_s6, [#allocation4]  }
 0x3a9   :  { %2072 = dma.done.wait [#allocation4], 128  }
 0x3aa   :  { %2073 = vsyncadd [#allocation4], 4294967168 }
 0x3ab   :  { %1468 = vsyncpa [#allocation3], 1 }
 0x3ac   :  { %1469 = vsyncpa [#allocation6], 1 }
 0x3ad   :  { %1470 = vsyncpa [#allocation9], 1 }
 0x3ae   :  { %1471 = vsyncpa [#allocation4], 1 }

// kernel: tpu_custom_call.1
= control target key start
LH: loop header
LB: loop body
LE: loop exit
PB: predicated region body
PF: predicated region fallthrough
CT: control target
= control target key end

     0   :  { %11 = vsyncpa [#allocation3], 0  ;;  %s2322_s0 = inlined_call_operand.hbm [shape: bf16[8,32], index: 0, kind: input, shape index: {}]   ;;  %s2323_s1 = inlined_call_operand.hbm [shape: f32[8,8], index: 1, kind: input, shape index: {}]   ;;  %s2324_s2 = inlined_call_operand.hbm [shape: bf16[32,1024], index: 2, kind: input, shape index: {}]   ;;  %s2325_s3 = inlined_call_operand.hbm [shape: f32[1,1024], index: 3, kind: input, shape index: {}]   ;;  %s2326_s4 = inlined_call_operand.hbm [shape: bf16[8,128,128], index: 4, kind: input, shape index: {}]   ;;  %s2327_s5 = inlined_call_operand.vmem [shape: f32[8,1,128], index: 5, kind: input, shape index: {}]   ;;  %s2328_s6 = inlined_call_operand.hbm [shape: f32[8,128], index: 6, kind: output, shape index: {}]  }
   0x1   :  { %12 = vsyncpa [#allocation6], 0 }
   0x2   :  { %13 = vsyncpa [#allocation9], 0 }
   0x3   :  { %14 = vsyncpa [#allocation4], 0  ;;  %s2074_s21 = smov [#allocation5]   ;;  %s2075_s23 = smov [#allocation8]  }
   0x4   :  { %s31_s22 = sshll.u32 %s2074_s21, 4  ;;  %s53_s24 = sshll.u32 %s2075_s23, 4  ;;  %s32_s22 = int_to_ptr.vmem [resolvable:$true] %s31_s22  ;;  %s54_s24 = int_to_ptr.vmem [resolvable:$true] %s53_s24 }
   0x5   :  { %s1954_s25 = scalar_lea.vmem %s32_s22, 128  ;;  %p1959_p1 = scmp.lt.s32.totalorder %s32_s22, %s32_s22 }
   0x6   :  { %p1955_p0 = scmp.ne.s32.totalorder %s32_s22, %s1954_s25  ;;  %p1960_p2 = scmp.lt.s32.totalorder %s1954_s25, %s1954_s25 }
   0x8   :  { %p1961_p3 = por %p1960_p2, %p1959_p1 }
   0xa   :  { %p1962_p4 = pnand %p1961_p3, %p1955_p0 }
   0xc   :  { %1965 = shalt.err (!%p1962_p4)
}
   0xd   :  { %34 = dma.hbm_to_vmem [thread:$0]  %s2323_s1, 128, %s32_s22, [#allocation6]  }
   0xe   :  { %s1974_s28 = scalar_lea.vmem %s54_s24, 128  ;;  %p1979_p6 = scmp.lt.s32.totalorder %s54_s24, %s54_s24 }
   0xf   :  { %p1975_p5 = scmp.ne.s32.totalorder %s54_s24, %s1974_s28  ;;  %p1980_p7 = scmp.lt.s32.totalorder %s1974_s28, %s1974_s28 }
  0x11   :  { %p1981_p8 = por %p1980_p7, %p1979_p6 }
  0x13   :  { %p1982_p9 = pnand %p1981_p8, %p1975_p5 }
  0x15   :  { %1985 = shalt.err (!%p1982_p9)
}
  0x16   :  { %56 = dma.hbm_to_vmem [thread:$0]  %s2325_s3, 128, %s54_s24, [#allocation9]  }
  0x17   :  { %s2076_s7 = smov [#allocation2]   ;;  %s2077_s9 = smov [#allocation7]  }
  0x18   :  { %s21_s8 = sshll.u32 %s2076_s7, 4  ;;  %s40_s10 = sshll.u32 %s2077_s9, 4  ;;  %s22_s8 = int_to_ptr.vmem [resolvable:$true] %s21_s8  ;;  %s41_s10 = int_to_ptr.vmem [resolvable:$true] %s40_s10 }
  0x19   :  { %s1994_s11 = scalar_lea.vmem %s22_s8, 64  ;;  %p1999_p11 = scmp.lt.s32.totalorder %s22_s8, %s22_s8 }
  0x1a   :  { %p1995_p10 = scmp.ne.s32.totalorder %s22_s8, %s1994_s11  ;;  %p2000_p12 = scmp.lt.s32.totalorder %s1994_s11, %s1994_s11 }
  0x1c   :  { %p2001_p13 = por %p2000_p12, %p1999_p11 }
  0x1e   :  { %p2002_p0 = pnand %p2001_p13, %p1995_p10 }
  0x20   :  { %2005 = shalt.err (!%p2002_p0)
}
  0x21   :  { %24 = dma.hbm_to_vmem [thread:$0]  %s2322_s0, 64, %s22_s8, [#allocation3]  }
  0x22   :  { %s2014_s13 = scalar_lea.vmem %s41_s10, 2048  ;;  %p2019_p2 = scmp.lt.s32.totalorder %s41_s10, %s41_s10 }
  0x23   :  { %p2015_p1 = scmp.ne.s32.totalorder %s41_s10, %s2014_s13  ;;  %p2020_p3 = scmp.lt.s32.totalorder %s2014_s13, %s2014_s13 }
  0x25   :  { %p2021_p4 = por %p2020_p3, %p2019_p2 }
  0x27   :  { %p2022_p5 = pnand %p2021_p4, %p2015_p1 }
  0x29   :  { %2025 = shalt.err (!%p2022_p5)
}
  0x2a   :  { %s2078_s3 = smov 512   ;;  %s2079_s14 = smov 32  }
  0x2b   :  { %46 = dma.hbm_to_vmem [thread:$0]  %s2324_s2, 2048, %s41_s10, [#allocation6], %s2078_s3, %s2078_s3, %s2079_s14  }
  0x2c   :  { %s2080_s17 = smov [#allocation10]  }
  0x2d   :  { %s62_s18 = sshll.u32 %s2080_s17, 4  ;;  %s63_s18 = int_to_ptr.vmem [resolvable:$true] %s62_s18 }
  0x2e   :  { %s2034_s19 = scalar_lea.vmem %s63_s18, 8192  ;;  %p2039_p7 = scmp.lt.s32.totalorder %s63_s18, %s63_s18 }
  0x2f   :  { %p2035_p6 = scmp.ne.s32.totalorder %s63_s18, %s2034_s19  ;;  %p2040_p8 = scmp.lt.s32.totalorder %s2034_s19, %s2034_s19 }
  0x31   :  { %p2041_p9 = por %p2040_p8, %p2039_p7 }
  0x33   :  { %p2042_p10 = pnand %p2041_p9, %p2035_p6 }
  0x35   :  { %2045 = shalt.err (!%p2042_p10)
}
  0x36   :  { %s2081_s0 = smov 64   ;;  %s2082_s20 = smov 4  }
  0x37   :  { %68 = dma.hbm_to_vmem [thread:$0]  %s2326_s4, 8192, %s63_s18, [#allocation9], %s2081_s0, %s2081_s0, %s2082_s20  }
  0x38   :  { %2066 = dma.done.wait [#allocation3], 64  }
  0x39   :  { %2067 = vsyncadd [#allocation3], 4294967232 }
  0x3a   :  { %2068 = dma.done.wait [#allocation6], 2176  }
  0x3b   :  { %2069 = vsyncadd [#allocation6], 4294965120 }
  0x3c   :  { %2070 = dma.done.wait [#allocation9], 8320  }
  0x3d   :  { %2071 = vsyncadd [#allocation9], 4294958976  ;;  %v2083_v0 = vmov 0   ;;  %v97_v1 = vld [vmem:[#allocation7 + $0x40] sm:$0xff]  ;;  %v98_v7 = vld [vmem:[#allocation7 + $0x48] sm:$0xff]  ;;  %vm227_vm0 = vcmask 261120   ;;  %v107_v54 = vlaneseq }
  0x3e   :  { %263 = vmatprep.mubr.bf16.mxu0 %v2083_v0  ;;  %304 = vmatprep.mubr.bf16.mxu1 %v2083_v0  ;;  %v101_v2 = vld [vmem:[#allocation7 + $0x60] sm:$0xff]  ;;  %v102_v9 = vld [vmem:[#allocation7 + $0x68] sm:$0xff]  ;;  %v99_v15 = vld [vmem:[#allocation7 + $0x50] sm:$0xff]  ;;  %v2084_v35 = vmov 0.0   ;;  %vm2085_vm1 = vmmov 0   ;;  %v2086_v52 = vmov 1  }
  0x3f   :  { %1823 = vset.pattern.permute.xlu1 %v2083_v0  ;;  %v89_v3 = vld [vmem:[#allocation7] sm:$0xff]  ;;  %v1481_v4 = vcombine.high %v97_v1, %v101_v2  ;;  %v1480_v5 = vcombine.low %v97_v1, %v101_v2  ;;  %v90_v10 = vld [vmem:[#allocation7 + $0x8] sm:$0xff]  ;;  %v1483_v12 = vcombine.high %v98_v7, %v102_v9  ;;  %v1482_v13 = vcombine.low %v98_v7, %v102_v9  ;;  %v103_v16 = vld [vmem:[#allocation7 + $0x70] sm:$0xff] }
  0x40   :  { %v93_v6 = vld [vmem:[#allocation7 + $0x20] sm:$0xff]  ;;  %v94_v11 = vld [vmem:[#allocation7 + $0x28] sm:$0xff]  ;;  %v100_v18 = vld [vmem:[#allocation7 + $0x58] sm:$0xff]  ;;  %v1485_v20 = vcombine.high %v99_v15, %v103_v16  ;;  %v1484_v27 = vcombine.low %v99_v15, %v103_v16  ;;  %1824 = vset.pattern.permute.xlu0 %v2086_v52  ;;  %v2087_v53 = vmov 2   ;;  %v2175_v55 = vshrl.u32 %v107_v54, 7 }
  0x41   :  { %v1473_v8 = vcombine.high %v89_v3, %v93_v6  ;;  %243 = vmatprep.subr.bf16.mxu0 %v1481_v4  ;;  %v1475_v14 = vcombine.high %v90_v10, %v94_v11  ;;  %v1472_v17 = vcombine.low %v89_v3, %v93_v6  ;;  %v104_v19 = vld [vmem:[#allocation7 + $0x78] sm:$0xff]  ;;  %284 = vmatprep.subr.bf16.mxu1 %v1483_v12  ;;  %v91_v21 = vld [vmem:[#allocation7 + $0x10] sm:$0xff]  ;;  %v1832_v34 = vld [vmem:[#allocation10 + $0x38] sm:$0xff]  }
  0x42   :  { %244 = vmatpush1.bf16.msra.mxu0 %v1480_v5  ;;  %v87_v22 = vld [vmem:[#allocation2] sm:$0xf]  ;;  %285 = vmatpush1.bf16.msra.mxu1 %v1482_v13  ;;  %v1474_v23 = vcombine.low %v90_v10, %v94_v11  ;;  %v1487_v25 = vcombine.high %v100_v18, %v104_v19  ;;  %v92_v26 = vld [vmem:[#allocation7 + $0x18] sm:$0xff]  ;;  %v1486_v30 = vcombine.low %v100_v18, %v104_v19  ;;  %v1833_v36 = vld [vmem:[#allocation10 + $0x78] sm:$0xff]   ;;  %v109_v56 = vsub.s32 0, %v2175_v55 }
  0x43   :  { %245 = vmatprep.subr.bf16.mxu0 %v1473_v8  ;;  %v95_v24 = vld [vmem:[#allocation7 + $0x30] sm:$0xff]  ;;  %286 = vmatprep.subr.bf16.mxu1 %v1475_v14  ;;  %v96_v28 = vld [vmem:[#allocation7 + $0x38] sm:$0xff]  ;;  %v1838_v41 = vld [vmem:[#allocation10 + $0x20] sm:$0xff]   ;;  %v113_v58 = vsub.s32 1, %v2175_v55 }
  0x44   :  { %v1477_v29 = vcombine.high %v91_v21, %v95_v24  ;;  %v1479_v31 = vcombine.high %v92_v26, %v96_v28  ;;  %v1476_v32 = vcombine.low %v91_v21, %v95_v24  ;;  %v1478_v33 = vcombine.low %v92_v26, %v96_v28  ;;  %v1834_v37 = vld [vmem:[#allocation10 + $0x30] sm:$0xff]   ;;  %v1836_v39 = vld [vmem:[#allocation10 + $0x28] sm:$0xff]   ;;  %v1839_v42 = vld [vmem:[#allocation10 + $0x60] sm:$0xff]  }
  0x45   :  { %v1835_v38 = vld [vmem:[#allocation10 + $0x70] sm:$0xff]   ;;  %v1837_v40 = vld [vmem:[#allocation10 + $0x68] sm:$0xff]   ;;  %v1840_v43 = vld [vmem:[#allocation10 + $0x18] sm:$0xff]  }
  0x46   :  { %246 = vmatpush1.bf16.msra.mxu0 %v1472_v17  ;;  %287 = vmatpush1.bf16.msra.mxu1 %v1474_v23  ;;  %v1841_v44 = vld [vmem:[#allocation10 + $0x58] sm:$0xff]   ;;  %v1842_v45 = vld [vmem:[#allocation10 + $0x10] sm:$0xff]   ;;  %v1844_v47 = vld [vmem:[#allocation10 + $0x8] sm:$0xff]  }
  0x47   :  { %325 = vmatprep.subr.bf16.mxu0 %v1485_v20  ;;  %366 = vmatprep.subr.bf16.mxu1 %v1487_v25  ;;  %v1843_v46 = vld [vmem:[#allocation10 + $0x50] sm:$0xff]   ;;  %v1845_v48 = vld [vmem:[#allocation10 + $0x48] sm:$0xff]   ;;  %v1846_v49 = vld [vmem:[#allocation10] sm:$0xff]  }
  0x48   :  { %v1847_v50 = vld [vmem:[#allocation10 + $0x40] sm:$0xff]   ;;  %v2170_v51 = vld [vmem:[#allocation5] sm:$0xff]  ;;  %v2178_v57 = vld [vmem:[#allocation8] sm:$0xff] }
  0x49   :  { %1488 = vmatmul.mubr.msk.bf16.vlgmr.msra.gmra.mxu0 %vm227_vm0, %v87_v22  ;;  %1489 = vmatmul.mubr.msk.bf16.vlgmr.msra.gmra.mxu1 %vm227_vm0, %v87_v22  ;;  %v110_v59 = vrot.slane %v2178_v57, %v109_v56  ;;  %v114_v60 = vrot.slane %v2178_v57, %v113_v58  ;;  %v1848_v4 = vld [vmem:[#allocation10 + $0xb8] sm:$0xff]   ;;  %v1850_v12 = vld [vmem:[#allocation10 + $0xb0] sm:$0xff]   ;;  %v1852_v18 = vld [vmem:[#allocation10 + $0xa8] sm:$0xff]   ;;  %v125_v56 = vsub.s32 4, %v2175_v55 }
  0x4a   :  { %326 = vmatpush1.bf16.msra.mxu0 %v1484_v27  ;;  %345 = vmatprep.mubr.bf16.mxu0 %v2083_v0  ;;  %v1849_v9 = vld [vmem:[#allocation10 + $0xf8] sm:$0xff]   ;;  %v1851_v15 = vld [vmem:[#allocation10 + $0xf0] sm:$0xff]   ;;  %v1853_v21 = vld [vmem:[#allocation10 + $0xe8] sm:$0xff]   ;;  %v117_v27 = vsub.s32 2, %v2175_v55 }
  0x4b   :  { %327 = vmatprep.subr.bf16.mxu0 %v1477_v29  ;;  %367 = vmatpush1.bf16.msra.mxu1 %v1486_v30  ;;  %v1854_v24 = vld [vmem:[#allocation10 + $0xa0] sm:$0xff]   ;;  %v1856_v28 = vld [vmem:[#allocation10 + $0x98] sm:$0xff]   ;;  %v121_v29 = vsub.s32 3, %v2175_v55  ;;  %v1869_v52 = vld [vmem:[#allocation10 + $0x168] sm:$0xff]  }
  0x4c   :  { %386 = vmatprep.mubr.bf16.mxu1 %v2083_v0  ;;  %368 = vmatprep.subr.bf16.mxu1 %v1479_v31  ;;  %v1855_v26 = vld [vmem:[#allocation10 + $0xe0] sm:$0xff]   ;;  %v1857_v30 = vld [vmem:[#allocation10 + $0xd8] sm:$0xff]   ;;  %v118_v31 = vrot.slane %v2178_v57, %v117_v27 }
  0x4d   :  { %528 = vperm.xlu1 %1823, %v2170_v51   ;;  %659 = vperm.xlu0 %1824, %v2170_v51   ;;  %v1871_v54 = vld [vmem:[#allocation10 + $0x160] sm:$0xff]   ;;  %v1872_v58 = vld [vmem:[#allocation10 + $0x118] sm:$0xff]  }
  0x4e   :  { %328 = vmatpush1.bf16.msra.mxu0 %v1476_v32  ;;  %v1858_v32 = vld [vmem:[#allocation10 + $0x90] sm:$0xff]  }
  0x4f   :  { %1643 = vmatprep.subr.bf16.mxu0 %v2084_v35  ;;  %369 = vmatpush1.bf16.msra.mxu1 %v1478_v33  ;;  %v122_v33 = vrot.slane %v2178_v57, %v121_v29 }
  0x50   :  { %1663 = vmatprep.subr.bf16.mxu1 %v2084_v35 }
  0x51   :  { %1490 = vmatmul.mubr.msk.bf16.vlgmr.msra.gmra.mxu0 %vm227_vm0, %v87_v22  ;;  %1825 = vset.pattern.permute.xlu1 %v2087_v53  ;;  %v1870_v53 = vld [vmem:[#allocation10 + $0x120] sm:$0xff]  }
  0x52   :  { %1644 = vmatpush3.bf16.msra.mxu0 %v1832_v34  ;;  %1491 = vmatmul.mubr.msk.bf16.vlgmr.msra.gmra.mxu1 %vm227_vm0, %v87_v22  ;;  %v1859_v34 = vld [vmem:[#allocation10 + $0xd0] sm:$0xff]  }
  0x53   :  { %1645 = vmatprep.subr.bf16.mxu0 %v2084_v35  ;;  %1664 = vmatpush3.bf16.msra.mxu1 %v1833_v36 }
  0x54   :  { %1665 = vmatprep.subr.bf16.mxu1 %v2084_v35  ;;  %1659 = vmatprep.mubr.msk.bf16.mxu0 %vm2085_vm1, %v2084_v35 }
  0x55   :  { %1679 = vmatprep.mubr.msk.bf16.mxu1 %vm2085_vm1, %v2084_v35  ;;  %790 = vperm.xlu1 %1825, %v2170_v51  }
  0x56   :  { %1646 = vmatpush3.bf16.msra.mxu0 %v1834_v37  ;;  %v1860_v37 = vld [vmem:[#allocation10 + $0x88] sm:$0xff]  }
  0x57   :  { %1647 = vmatprep.subr.bf16.mxu0 %v2084_v35  ;;  %1666 = vmatpush3.bf16.msra.mxu1 %v1835_v38 }
  0x58   :  { %1667 = vmatprep.subr.bf16.mxu1 %v2084_v35 }
  0x5a   :  { %1648 = vmatpush3.bf16.msra.mxu0 %v1836_v39  ;;  %v1861_v39 = vld [vmem:[#allocation10 + $0xc8] sm:$0xff]  }
  0x5b   :  { %1649 = vmatprep.subr.bf16.mxu0 %v2084_v35  ;;  %1668 = vmatpush3.bf16.msra.mxu1 %v1837_v40 }
  0x5c   :  { %1669 = vmatprep.subr.bf16.mxu1 %v2084_v35 }
  0x5e   :  { %1650 = vmatpush3.bf16.msra.mxu0 %v1838_v41  ;;  %v1862_v41 = vld [vmem:[#allocation10 + $0x80] sm:$0xff]  }
  0x5f   :  { %1651 = vmatprep.subr.bf16.mxu0 %v2084_v35  ;;  %1670 = vmatpush3.bf16.msra.mxu1 %v1839_v42 }
  0x60   :  { %1671 = vmatprep.subr.bf16.mxu1 %v2084_v35 }
  0x62   :  { %1652 = vmatpush3.bf16.msra.mxu0 %v1840_v43  ;;  %v1863_v43 = vld [vmem:[#allocation10 + $0xc0] sm:$0xff]  }
  0x63   :  { %1653 = vmatprep.subr.bf16.mxu0 %v2084_v35  ;;  %1672 = vmatpush3.bf16.msra.mxu1 %v1841_v44 }
  0x64   :  { %1673 = vmatprep.subr.bf16.mxu1 %v2084_v35 }
  0x66   :  { %1654 = vmatpush3.bf16.msra.mxu0 %v1842_v45  ;;  %v1864_v45 = vld [vmem:[#allocation10 + $0x138] sm:$0xff]  }
  0x67   :  { %1655 = vmatprep.subr.bf16.mxu0 %v2084_v35  ;;  %1674 = vmatpush3.bf16.msra.mxu1 %v1843_v46 }
  0x68   :  { %1675 = vmatprep.subr.bf16.mxu1 %v2084_v35 }
  0x6a   :  { %1656 = vmatpush3.bf16.msra.mxu0 %v1844_v47  ;;  %v1865_v47 = vld [vmem:[#allocation10 + $0x178] sm:$0xff]  }
  0x6b   :  { %1657 = vmatprep.subr.bf16.mxu0 %v2084_v35  ;;  %1676 = vmatpush3.bf16.msra.mxu1 %v1845_v48  ;;  %v1866_v48 = vld [vmem:[#allocation10 + $0x130] sm:$0xff]  }
  0x6c   :  { %1677 = vmatprep.subr.bf16.mxu1 %v2084_v35 }
  0x6e   :  { %1658 = vmatpush3.bf16.msra.mxu0 %v1846_v49  ;;  %v1867_v49 = vld [vmem:[#allocation10 + $0x170] sm:$0xff]  }
  0x6f   :  { %1683 = vmatprep.subr.bf16.mxu0 %v2084_v35  ;;  %1678 = vmatpush3.bf16.msra.mxu1 %v1847_v50  ;;  %v1868_v50 = vld [vmem:[#allocation10 + $0x128] sm:$0xff]  }
  0x70   :  { %1703 = vmatprep.subr.bf16.mxu1 %v2084_v35 }
 0x109   :  { %v265_v61 = vpop.f32.mrf.mxu0  ;;  %v306_v0 = vpop.f32.mrf.mxu1 }
 0x10a   :  { %v266_v62 = vadd.f32 %v265_v61, %v110_v59  ;;  %v307_v36 = vadd.f32 %v306_v0, %v118_v31  ;;  %v1873_v59 = vld [vmem:[#allocation10 + $0x158] sm:$0xff]   ;;  %v129_v61 = vsub.s32 5, %v2175_v55  ;;  %v1894_v31 = vld [vmem:[#allocation10 + $0x1c8] sm:$0xff]  }
 0x10b   :  { %v267_v63 = vpop.f32.mrf.mxu0  ;;  %v308_v5 = vpop.f32.mrf.mxu1 }
 0x10c   :  { %v395_v1 = vmax.f32 %v266_v62, 0.0  ;;  %v268_v2 = vadd.f32 %v267_v63, %v114_v60  ;;  %v309_v38 = vadd.f32 %v308_v5, %v122_v33  ;;  %v397_v40 = vmax.f32 %v307_v36, 0.0  ;;  %v1874_v62 = vld [vmem:[#allocation10 + $0x110] sm:$0xff]   ;;  %v1893_v33 = vld [vmem:[#allocation10 + $0x180] sm:$0xff]  }
 0x10d   :  { %v269_v3 = vpop.f32.mrf.mxu0  ;;  %v310_v10 = vpop.f32.mrf.mxu1  ;;  %v126_v60 = vrot.slane %v2178_v57, %v125_v56  ;;  %v1875_v63 = vld [vmem:[#allocation10 + $0x150] sm:$0xff]  }
 0x10e   :  { %v403_v6 = vpack.c.bf16 %v395_v1, %v395_v1  ;;  %v396_v7 = vmax.f32 %v268_v2, 0.0  ;;  %v398_v42 = vmax.f32 %v309_v38, 0.0  ;;  %v664_v44 = vpack.c.bf16 %v397_v40, %v397_v40  ;;  %v1876_v2 = vld [vmem:[#allocation10 + $0x108] sm:$0xff]   ;;  %v1880_v10 = vld [vmem:[#allocation10 + $0x1b8] sm:$0xff]  }
 0x10f   :  { %v270_v8 = vpop.f32.mrf.mxu0  ;;  %v311_v13 = vpop.f32.mrf.mxu1  ;;  %v130_v1 = vrot.slane %v2178_v57, %v129_v61  ;;  %v1877_v3 = vld [vmem:[#allocation10 + $0x148] sm:$0xff]  }
 0x110   :  { %v533_v11 = vpack.c.bf16 %v396_v7, %v396_v7  ;;  %1660 = vmatmul.mubr.bf16.vlgmr.msra.gmra.mxu0 %v403_v6  ;;  %v795_v46 = vpack.c.bf16 %v398_v42, %v398_v42  ;;  %v1878_v6 = vld [vmem:[#allocation10 + $0x100] sm:$0xff]   ;;  %v1881_v13 = vld [vmem:[#allocation10 + $0x1b0] sm:$0xff]  }
 0x111   :  { %1684 = vmatpush3.bf16.msra.mxu0 %v1848_v4  ;;  %1699 = vmatprep.mubr.msk.bf16.mxu0 %vm2085_vm1, %v2084_v35  ;;  %v2185_v14 = vpop.f32.mrf.mxu0  ;;  %v1879_v7 = vld [vmem:[#allocation10 + $0x140] sm:$0xff]  }
 0x112   :  { %1680 = vmatmul.mubr.bf16.vlgmr.msra.gmra.mxu1 %v533_v11  ;;  %1685 = vmatprep.subr.bf16.mxu0 %v2084_v35  ;;  %v2192_v17 = vpop.f32.mrf.mxu1  ;;  %v348_v0 = vadd.f32 %v2185_v14, %v126_v60  ;;  %v1882_v11 = vld [vmem:[#allocation10 + $0x1f8] sm:$0xff]   ;;  %v1884_v14 = vld [vmem:[#allocation10 + $0x1f0] sm:$0xff]  }
 0x113   :  { %1704 = vmatpush3.bf16.msra.mxu1 %v1849_v9  ;;  %1719 = vmatprep.mubr.msk.bf16.mxu1 %vm2085_vm1, %v2084_v35  ;;  %v2190_v16 = vpop.f32.mrf.mxu0 }
 0x114   :  { %1705 = vmatprep.subr.bf16.mxu1 %v2084_v35  ;;  %v2195_v20 = vpop.f32.mrf.mxu1  ;;  %v399_v4 = vmax.f32 %v348_v0, 0.0  ;;  %v350_v5 = vadd.f32 %v2190_v16, %v130_v1  ;;  %v1886_v16 = vld [vmem:[#allocation10 + $0x1e8] sm:$0xff]  }
 0x115   :  { %1686 = vmatpush3.bf16.msra.mxu0 %v1850_v12  ;;  %v351_v19 = vpop.f32.mrf.mxu0  ;;  %v1532_v0 = vld [vmem:[%s2327_s5 + $0x4] ss:$0 sm:$0xff] }
 0x116   :  { %1687 = vmatprep.subr.bf16.mxu0 %v2084_v35  ;;  %v392_v23 = vpop.f32.mrf.mxu1  ;;  %v926_v8 = vpack.c.bf16 %v399_v4, %v399_v4  ;;  %v400_v9 = vmax.f32 %v350_v5, 0.0  ;;  %v1888_v19 = vld [vmem:[#allocation10 + $0x1e0] sm:$0xff]  }
 0x117   :  { %1706 = vmatpush3.bf16.msra.mxu1 %v1851_v15  ;;  %v352_v22 = vpop.f32.mrf.mxu0  ;;  %v1883_v15 = vld [vmem:[#allocation10 + $0x1a8] sm:$0xff]   ;;  %v137_v23 = vsub.s32 7, %v2175_v55 }
 0x118   :  { %1707 = vmatprep.subr.bf16.mxu1 %v2084_v35  ;;  %v393_v25 = vpop.f32.mrf.mxu1  ;;  %v1057_v12 = vpack.c.bf16 %v400_v9, %v400_v9  ;;  %v1887_v22 = vld [vmem:[#allocation10 + $0x198] sm:$0xff]  }
 0x119   :  { %1688 = vmatpush3.bf16.msra.mxu0 %v1852_v18  ;;  %v1885_v18 = vld [vmem:[#allocation10 + $0x1a0] sm:$0xff]   ;;  %v138_v27 = vrot.slane %v2178_v57, %v137_v23 }
 0x11a   :  { %1689 = vmatprep.subr.bf16.mxu0 %v2084_v35 }
 0x11b   :  { %1708 = vmatpush3.bf16.msra.mxu1 %v1853_v21  ;;  %v133_v21 = vsub.s32 6, %v2175_v55  ;;  %v1891_v55 = vld [vmem:[#allocation10 + $0x188] sm:$0xff]  }
 0x11c   :  { %1709 = vmatprep.subr.bf16.mxu1 %v2084_v35 }
 0x11d   :  { %1690 = vmatpush3.bf16.msra.mxu0 %v1854_v24  ;;  %v1890_v24 = vld [vmem:[#allocation10 + $0x1d8] sm:$0xff]   ;;  %v134_v25 = vrot.slane %v2178_v57, %v133_v21 }
 0x11e   :  { %1691 = vmatprep.subr.bf16.mxu0 %v2084_v35 }
 0x11f   :  { %1710 = vmatpush3.bf16.msra.mxu1 %v1855_v26  ;;  %v1889_v26 = vld [vmem:[#allocation10 + $0x190] sm:$0xff]   ;;  %v389_v29 = vadd.f32 %v2192_v17, %v134_v25 }
 0x120   :  { %1711 = vmatprep.subr.bf16.mxu1 %v2084_v35 }
 0x121   :  { %1692 = vmatpush3.bf16.msra.mxu0 %v1856_v28  ;;  %v1892_v28 = vld [vmem:[#allocation10 + $0x1d0] sm:$0xff]  }
 0x122   :  { %1693 = vmatprep.subr.bf16.mxu0 %v2084_v35 }
 0x123   :  { %1712 = vmatpush3.bf16.msra.mxu1 %v1857_v30  ;;  %v391_v30 = vadd.f32 %v2195_v20, %v138_v27  ;;  %v2088_v20 = vmov 4   ;;  %v2297_v27 = vpop.permute.xlu1 %528 }
 0x124   :  { %1713 = vmatprep.subr.bf16.mxu1 %v2084_v35  ;;  %1827 = vset.pattern.permute.xlu0 %v2088_v20 }
 0x125   :  { %1694 = vmatpush3.bf16.msra.mxu0 %v1858_v32  ;;  %v401_v32 = vmax.f32 %v389_v29, 0.0  ;;  %v402_v57 = vmax.f32 %v391_v30, 0.0 }
 0x126   :  { %1695 = vmatprep.subr.bf16.mxu0 %v2084_v35 }
 0x127   :  { %1714 = vmatpush3.bf16.msra.mxu1 %v1859_v34  ;;  %v1895_v34 = vld [vmem:[#allocation10 + $0x1c0] sm:$0xff]   ;;  %v1188_v36 = vpack.c.bf16 %v401_v32, %v401_v32  ;;  %v1319_v17 = vpack.c.bf16 %v402_v57, %v402_v57  ;;  %v2301_v29 = vpop.permute.xlu1 %790 }
 0x128   :  { %1715 = vmatprep.subr.bf16.mxu1 %v2084_v35 }
 0x129   :  { %1696 = vmatpush3.bf16.msra.mxu0 %v1860_v37  ;;  %v1492_v37 = vld [vmem:[%s2327_s5] ss:$0 sm:$0xff] }
 0x12a   :  { %1697 = vmatprep.subr.bf16.mxu0 %v2084_v35 }
 0x12b   :  { %1716 = vmatpush3.bf16.msra.mxu1 %v1861_v39  ;;  %v1502_v39 = vld [vmem:[%s2327_s5 + $0x1] ss:$0 sm:$0xff] }
 0x12c   :  { %1717 = vmatprep.subr.bf16.mxu1 %v2084_v35 }
 0x12d   :  { %1698 = vmatpush3.bf16.msra.mxu0 %v1862_v41 }
 0x12e   :  { %1723 = vmatprep.subr.bf16.mxu0 %v2084_v35 }
 0x12f   :  { %1718 = vmatpush3.bf16.msra.mxu1 %v1863_v43 }
 0x130   :  { %1700 = vmatmul.mubr.bf16.vlgmr.msra.gmra.mxu0 %v664_v44  ;;  %1743 = vmatprep.subr.bf16.mxu1 %v2084_v35 }
 0x131   :  { %1724 = vmatpush3.bf16.msra.mxu0 %v1864_v45  ;;  %1739 = vmatprep.mubr.msk.bf16.mxu0 %vm2085_vm1, %v2084_v35 }
 0x132   :  { %1720 = vmatmul.mubr.bf16.vlgmr.msra.gmra.mxu1 %v795_v46  ;;  %1725 = vmatprep.subr.bf16.mxu0 %v2084_v35 }
 0x133   :  { %1744 = vmatpush3.bf16.msra.mxu1 %v1865_v47  ;;  %1759 = vmatprep.mubr.msk.bf16.mxu1 %vm2085_vm1, %v2084_v35 }
 0x134   :  { %1745 = vmatprep.subr.bf16.mxu1 %v2084_v35 }
 0x135   :  { %1726 = vmatpush3.bf16.msra.mxu0 %v1866_v48  ;;  %v2089_v48 = vmov 3  }
 0x136   :  { %1727 = vmatprep.subr.bf16.mxu0 %v2084_v35  ;;  %1826 = vset.pattern.permute.xlu1 %v2089_v48 }
 0x137   :  { %1746 = vmatpush3.bf16.msra.mxu1 %v1867_v49  ;;  %v1512_v49 = vld [vmem:[%s2327_s5 + $0x2] ss:$0 sm:$0xff] }
 0x138   :  { %1747 = vmatprep.subr.bf16.mxu1 %v2084_v35 }
 0x139   :  { %1728 = vmatpush3.bf16.msra.mxu0 %v1868_v50 }
 0x13a   :  { %1729 = vmatprep.subr.bf16.mxu0 %v2084_v35 }
 0x13b   :  { %1748 = vmatpush3.bf16.msra.mxu1 %v1869_v52  ;;  %v1522_v52 = vld [vmem:[%s2327_s5 + $0x3] ss:$0 sm:$0xff] }
 0x13c   :  { %1749 = vmatprep.subr.bf16.mxu1 %v2084_v35 }
 0x13d   :  { %1730 = vmatpush3.bf16.msra.mxu0 %v1870_v53 }
 0x13e   :  { %1731 = vmatprep.subr.bf16.mxu0 %v2084_v35 }
 0x13f   :  { %1750 = vmatpush3.bf16.msra.mxu1 %v1871_v54 }
 0x140   :  { %1751 = vmatprep.subr.bf16.mxu1 %v2084_v35 }
 0x141   :  { %1732 = vmatpush3.bf16.msra.mxu0 %v1872_v58 }
 0x142   :  { %1733 = vmatprep.subr.bf16.mxu0 %v2084_v35 }
 0x143   :  { %1752 = vmatpush3.bf16.msra.mxu1 %v1873_v59 }
 0x144   :  { %1753 = vmatprep.subr.bf16.mxu1 %v2084_v35 }
 0x145   :  { %1734 = vmatpush3.bf16.msra.mxu0 %v1874_v62 }
 0x146   :  { %1735 = vmatprep.subr.bf16.mxu0 %v2084_v35 }
 0x147   :  { %1754 = vmatpush3.bf16.msra.mxu1 %v1875_v63 }
 0x148   :  { %1755 = vmatprep.subr.bf16.mxu1 %v2084_v35 }
 0x149   :  { %1736 = vmatpush3.bf16.msra.mxu0 %v1876_v2  ;;  %v1542_v2 = vld [vmem:[%s2327_s5 + $0x5] ss:$0 sm:$0xff] }
 0x14a   :  { %1737 = vmatprep.subr.bf16.mxu0 %v2084_v35 }
 0x14b   :  { %1756 = vmatpush3.bf16.msra.mxu1 %v1877_v3 }
 0x14c   :  { %1757 = vmatprep.subr.bf16.mxu1 %v2084_v35 }
 0x14d   :  { %1738 = vmatpush3.bf16.msra.mxu0 %v1878_v6 }
 0x14e   :  { %1763 = vmatprep.subr.bf16.mxu0 %v2084_v35 }
 0x14f   :  { %1758 = vmatpush3.bf16.msra.mxu1 %v1879_v7 }
 0x150   :  { %1740 = vmatmul.mubr.bf16.vlgmr.msra.gmra.mxu0 %v926_v8  ;;  %1783 = vmatprep.subr.bf16.mxu1 %v2084_v35 }
 0x151   :  { %1764 = vmatpush3.bf16.msra.mxu0 %v1880_v10  ;;  %1779 = vmatprep.mubr.msk.bf16.mxu0 %vm2085_vm1, %v2084_v35 }
 0x152   :  { %1760 = vmatmul.mubr.bf16.vlgmr.msra.gmra.mxu1 %v1057_v12  ;;  %1765 = vmatprep.subr.bf16.mxu0 %v2084_v35  ;;  %v1552_v12 = vld [vmem:[%s2327_s5 + $0x6] ss:$0 sm:$0xff] }
 0x153   :  { %1784 = vmatpush3.bf16.msra.mxu1 %v1882_v11  ;;  %1799 = vmatprep.mubr.msk.bf16.mxu1 %vm2085_vm1, %v2084_v35 }
 0x154   :  { %1785 = vmatprep.subr.bf16.mxu1 %v2084_v35 }
 0x155   :  { %1766 = vmatpush3.bf16.msra.mxu0 %v1881_v13 }
 0x156   :  { %1767 = vmatprep.subr.bf16.mxu0 %v2084_v35 }
 0x157   :  { %1786 = vmatpush3.bf16.msra.mxu1 %v1884_v14  ;;  %v1562_v14 = vld [vmem:[%s2327_s5 + $0x7] ss:$0 sm:$0xff]  ;;  %s2093_s5 = smov [#allocation11]  }
 0x158   :  { %1787 = vmatprep.subr.bf16.mxu1 %v2084_v35  ;;  %s1461_s12 = sshll.u32 %s2093_s5, 4  ;;  %s1462_s12 = int_to_ptr.vmem [resolvable:$true] %s1461_s12 }
 0x159   :  { %1768 = vmatpush3.bf16.msra.mxu0 %v1883_v15  ;;  %s2046_s13 = scalar_lea.vmem %s1462_s12, 128  ;;  %p2051_p12 = scmp.lt.s32.totalorder %s1462_s12, %s1462_s12 }
 0x15a   :  { %1769 = vmatprep.subr.bf16.mxu0 %v2084_v35  ;;  %p2047_p11 = scmp.ne.s32.totalorder %s1462_s12, %s2046_s13  ;;  %p2052_p13 = scmp.lt.s32.totalorder %s2046_s13, %s2046_s13 }
 0x15b   :  { %1788 = vmatpush3.bf16.msra.mxu1 %v1886_v16 }
 0x15c   :  { %1789 = vmatprep.subr.bf16.mxu1 %v2084_v35  ;;  %p2053_p0 = por %p2052_p13, %p2051_p12 }
 0x15d   :  { %1770 = vmatpush3.bf16.msra.mxu0 %v1885_v18 }
 0x15e   :  { %1771 = vmatprep.subr.bf16.mxu0 %v2084_v35  ;;  %p2054_p1 = pnand %p2053_p0, %p2047_p11 }
 0x15f   :  { %1790 = vmatpush3.bf16.msra.mxu1 %v1888_v19 }
 0x160   :  { %1791 = vmatprep.subr.bf16.mxu1 %v2084_v35 }
 0x161   :  { %1772 = vmatpush3.bf16.msra.mxu0 %v1887_v22 }
 0x162   :  { %1773 = vmatprep.subr.bf16.mxu0 %v2084_v35 }
 0x163   :  { %1792 = vmatpush3.bf16.msra.mxu1 %v1890_v24 }
 0x164   :  { %1793 = vmatprep.subr.bf16.mxu1 %v2084_v35 }
 0x165   :  { %1774 = vmatpush3.bf16.msra.mxu0 %v1889_v26  ;;  %v2090_v26 = vmov 5  }
 0x166   :  { %1775 = vmatprep.subr.bf16.mxu0 %v2084_v35 }
 0x167   :  { %1794 = vmatpush3.bf16.msra.mxu1 %v1892_v28  ;;  %v2299_v28 = vpop.permute.xlu0 %659 }
 0x168   :  { %1795 = vmatprep.subr.bf16.mxu1 %v2084_v35 }
 0x169   :  { %1776 = vmatpush3.bf16.msra.mxu0 %v1891_v55 }
 0x16a   :  { %1777 = vmatprep.subr.bf16.mxu0 %v2084_v35 }
 0x16b   :  { %1796 = vmatpush3.bf16.msra.mxu1 %v1894_v31 }
 0x16c   :  { %1797 = vmatprep.subr.bf16.mxu1 %v2084_v35 }
 0x16d   :  { %1778 = vmatpush3.bf16.msra.mxu0 %v1893_v33 }
 0x16f   :  { %1798 = vmatpush3.bf16.msra.mxu1 %v1895_v34 }
 0x170   :  { %1780 = vmatmul.mubr.bf16.vlgmr.msra.gmra.mxu0 %v1188_v36 }
 0x172   :  { %1800 = vmatmul.mubr.bf16.vlgmr.msra.gmra.mxu1 %v1319_v17 }
 0x1d0   :  { %v509_v38 = vpop.f32.mrf.mxu0 }
 0x1d1   :  { %v2271_v40 = vadd.f32 %v1492_v37, %v509_v38 }
 0x1d2   :  { %v1661_v41 = vpop.f32.mrf.mxu0  ;;  %v641_v35 = vpop.f32.mrf.mxu1 }
 0x1d3   :  { %v2273_v42 = vadd.f32 %v1502_v39, %v641_v35  ;;  %515 = vmax.xlane.f32.xlu0 %v2271_v40 }
 0x1d4   :  { %v512_v43 = vpop.f32.mrf.mxu0  ;;  %v1681_v44 = vpop.f32.mrf.mxu1 }
 0x1d5   :  { %647 = vmax.xlane.f32.xlu1 %v2273_v42 }
 0x1d6   :  { %v1662_v45 = vpop.f32.mrf.mxu0  ;;  %v644_v46 = vpop.f32.mrf.mxu1 }
 0x1d8   :  { %v1682_v47 = vpop.f32.mrf.mxu1 }
 0x1f0   :  { %v772_v50 = vpop.f32.mrf.mxu0 }
 0x1f1   :  { %v773_v53 = vadd.f32 %v1512_v49, %v772_v50 }
 0x1f2   :  { %v1701_v54 = vpop.f32.mrf.mxu0  ;;  %v903_v56 = vpop.f32.mrf.mxu1 }
 0x1f3   :  { %v904_v58 = vadd.f32 %v1522_v52, %v903_v56  ;;  %778 = vmax.xlane.f32.xlu1 %v773_v53  ;;  %v2092_v56 = vmov 6  }
 0x1f4   :  { %v775_v59 = vpop.f32.mrf.mxu0  ;;  %v1721_v60 = vpop.f32.mrf.mxu1 }
 0x1f5   :  { %909 = vmax.xlane.f32.xlu0 %v904_v58 }
 0x1f6   :  { %v1702_v61 = vpop.f32.mrf.mxu0  ;;  %v906_v62 = vpop.f32.mrf.mxu1 }
 0x1f8   :  { %v1722_v63 = vpop.f32.mrf.mxu1 }
 0x210   :  { %v1034_v1 = vpop.f32.mrf.mxu0 }
 0x211   :  { %v1035_v3 = vadd.f32 %v1532_v0, %v1034_v1 }
 0x212   :  { %v1741_v4 = vpop.f32.mrf.mxu0  ;;  %v1165_v5 = vpop.f32.mrf.mxu1 }
 0x213   :  { %v1166_v6 = vadd.f32 %v1542_v2, %v1165_v5  ;;  %1040 = vmax.xlane.f32.xlu1 %v1035_v3 }
 0x214   :  { %v1037_v7 = vpop.f32.mrf.mxu0  ;;  %v1761_v8 = vpop.f32.mrf.mxu1 }
 0x215   :  { %1171 = vmax.xlane.f32.xlu0 %v1166_v6 }
 0x216   :  { %v1742_v9 = vpop.f32.mrf.mxu0  ;;  %v1168_v10 = vpop.f32.mrf.mxu1 }
 0x218   :  { %v1762_v11 = vpop.f32.mrf.mxu1 }
 0x224   :  { %921 = vperm.xlu1 %1826, %v2170_v51  }
 0x228   :  { %1828 = vset.pattern.permute.xlu1 %v2090_v26 }
 0x230   :  { %v1296_v13 = vpop.f32.mrf.mxu0 }
 0x231   :  { %v1297_v15 = vadd.f32 %v1552_v12, %v1296_v13 }
 0x232   :  { %v1427_v16 = vpop.f32.mrf.mxu1  ;;  %v1781_v18 = vpop.f32.mrf.mxu0 }
 0x233   :  { %1302 = vmax.xlane.f32.xlu0 %v1297_v15  ;;  %v1428_v19 = vadd.f32 %v1562_v14, %v1427_v16 }
 0x234   :  { %v1801_v21 = vpop.f32.mrf.mxu1  ;;  %v1299_v22 = vpop.f32.mrf.mxu0 }
 0x236   :  { %v1430_v23 = vpop.f32.mrf.mxu1  ;;  %v1782_v24 = vpop.f32.mrf.mxu0 }
 0x237   :  { %1433 = vmax.xlane.f32.xlu0 %v1428_v19 }
 0x238   :  { %v1802_v25 = vpop.f32.mrf.mxu1 }
 0x24d   :  { %1052 = vperm.xlu0 %1827, %v2170_v51  }
 0x25c   :  { %v516_v55 = vpop.xlane.xlu0 %515 }
 0x25d   :  { %v517_v30 = vsub.f32 %v2271_v40, %v516_v55 }
 0x25e   :  { %v648_v31 = vpop.xlane.xlu1 %647 }
 0x25f   :  { %v518_v32 = vmul.f32 1.442695, %v517_v30  ;;  %v649_v33 = vsub.f32 %v2273_v42, %v648_v31  ;;  %v2091_v42 = vmov 7  }
 0x260   :  { %1831 = vset.pattern.permute.xlu0 %v2091_v42 }
 0x261   :  { %1896 = vpow2.f32 %v518_v32  ;;  %v650_v57 = vmul.f32 1.442695, %v649_v33 }
 0x263   :  { %1898 = vpow2.f32 %v650_v57 }
 0x26e   :  { %v2305_v34 = vpop.eup %1896 }
 0x26f   :  { %520 = vadd.xlane.f32.xlu0 %v2305_v34 }
 0x270   :  { %v2308_v36 = vpop.eup %1898 }
 0x273   :  { %652 = vadd.xlane.f32.xlu0 %v2308_v36 }
 0x27c   :  { %v779_v17 = vpop.xlane.xlu1 %778 }
 0x27d   :  { %v780_v20 = vsub.f32 %v773_v53, %v779_v17 }
 0x27e   :  { %v910_v37 = vpop.xlane.xlu0 %909 }
 0x27f   :  { %v781_v38 = vmul.f32 1.442695, %v780_v20  ;;  %v911_v39 = vsub.f32 %v904_v58, %v910_v37 }
 0x281   :  { %1900 = vpow2.f32 %v781_v38  ;;  %v912_v40 = vmul.f32 1.442695, %v911_v39 }
 0x283   :  { %1902 = vpow2.f32 %v912_v40 }
 0x28e   :  { %v1901_v41 = vpop.eup %1900 }
 0x28f   :  { %783 = vadd.xlane.f32.xlu1 %v1901_v41 }
 0x290   :  { %v1903_v35 = vpop.eup %1902 }
 0x291   :  { %914 = vadd.xlane.f32.xlu0 %v1903_v35 }
 0x29c   :  { %v1041_v43 = vpop.xlane.xlu1 %1040 }
 0x29d   :  { %v1042_v44 = vsub.f32 %v1035_v3, %v1041_v43 }
 0x29e   :  { %v1172_v45 = vpop.xlane.xlu0 %1171 }
 0x29f   :  { %v1043_v46 = vmul.f32 1.442695, %v1042_v44  ;;  %v1173_v47 = vsub.f32 %v1166_v6, %v1172_v45 }
 0x2a0   :  { %v922_v1 = vpop.permute.xlu1 %921 }
 0x2a1   :  { %1904 = vpow2.f32 %v1043_v46  ;;  %v1174_v48 = vmul.f32 1.442695, %v1173_v47 }
 0x2a3   :  { %1906 = vpow2.f32 %v1174_v48 }
 0x2ae   :  { %v1905_v49 = vpop.eup %1904 }
 0x2af   :  { %1045 = vadd.xlane.f32.xlu0 %v1905_v49 }
 0x2b0   :  { %v1907_v50 = vpop.eup %1906 }
 0x2b1   :  { %1176 = vadd.xlane.f32.xlu1 %v1907_v50 }
 0x2bc   :  { %v1303_v52 = vpop.xlane.xlu0 %1302 }
 0x2bd   :  { %v1304_v53 = vsub.f32 %v1297_v15, %v1303_v52 }
 0x2bf   :  { %v1305_v54 = vmul.f32 1.442695, %v1304_v53 }
 0x2c0   :  { %v1434_v58 = vpop.xlane.xlu0 %1433 }
 0x2c1   :  { %1908 = vpow2.f32 %v1305_v54  ;;  %v1435_v60 = vsub.f32 %v1428_v19, %v1434_v58 }
 0x2c2   :  { %1183 = vperm.xlu1 %1828, %v2170_v51  }
 0x2c3   :  { %v1436_v61 = vmul.f32 1.442695, %v1435_v60 }
 0x2c5   :  { %1910 = vpow2.f32 %v1436_v61 }
 0x2c6   :  { %1829 = vset.pattern.permute.xlu1 %v2092_v56 }
 0x2c8   :  { %v1053_v63 = vpop.permute.xlu0 %1052 }
 0x2ce   :  { %v1909_v59 = vpop.eup %1908 }
 0x2cf   :  { %1307 = vadd.xlane.f32.xlu0 %v1909_v59 }
 0x2d2   :  { %v1911_v62 = vpop.eup %1910 }
 0x2e6   :  { %1438 = vadd.xlane.f32.xlu1 %v1911_v62 }
 0x2f7   :  { %1314 = vperm.xlu1 %1829, %v2170_v51  }
 0x2f8   :  { %v521_v0 = vpop.xlane.xlu0 %520 }
 0x2f9   :  { %1912 = vrcp.f32 %v521_v0 }
 0x2fb   :  { %1830 = vset.pattern.permute.xlu1 %v2091_v42 }
 0x2fc   :  { %1445 = vperm.xlu1 %1830, %v2170_v51   ;;  %v653_v2 = vpop.xlane.xlu0 %652 }
 0x2fd   :  { %1914 = vrcp.f32 %v653_v2 }
 0x306   :  { %v1913_v8 = vpop.eup %1912 }
 0x307   :  { %v523_v51 = vmul.f32 %v1913_v8, %v2305_v34 }
 0x309   :  { %v524_v14 = vmul.f32 1.442695, %v523_v51 }
 0x30a   :  { %v1915_v9 = vpop.eup %1914 }
 0x30b   :  { %v655_v11 = vmul.f32 %v1915_v9, %v2308_v36 }
 0x30d   :  { %v656_v15 = vmul.f32 1.442695, %v655_v11 }
 0x318   :  { %v784_v3 = vpop.xlane.xlu1 %783 }
 0x319   :  { %1916 = vrcp.f32 %v784_v3 }
 0x31a   :  { %v915_v4 = vpop.xlane.xlu0 %914 }
 0x31b   :  { %1918 = vrcp.f32 %v915_v4 }
 0x326   :  { %v1917_v10 = vpop.eup %1916 }
 0x327   :  { %v786_v12 = vmul.f32 %v1917_v10, %v1901_v41 }
 0x328   :  { %v1919_v13 = vpop.eup %1918 }
 0x329   :  { %v787_v18 = vmul.f32 1.442695, %v786_v12  ;;  %v917_v21 = vmul.f32 %v1919_v13, %v1903_v35 }
 0x32b   :  { %v918_v25 = vmul.f32 1.442695, %v917_v21 }
 0x338   :  { %v1046_v5 = vpop.xlane.xlu0 %1045 }
 0x339   :  { %1920 = vrcp.f32 %v1046_v5 }
 0x33a   :  { %v1177_v6 = vpop.xlane.xlu1 %1176 }
 0x33b   :  { %1922 = vrcp.f32 %v1177_v6 }
 0x33e   :  { %v1184_v19 = vpop.permute.xlu1 %1183 }
 0x346   :  { %v1921_v16 = vpop.eup %1920 }
 0x347   :  { %v1048_v22 = vmul.f32 %v1921_v16, %v1905_v49 }
 0x348   :  { %v1923_v23 = vpop.eup %1922 }
 0x349   :  { %v1049_v55 = vmul.f32 1.442695, %v1048_v22  ;;  %v1179_v30 = vmul.f32 %v1923_v23, %v1907_v50 }
 0x34b   :  { %v1180_v32 = vmul.f32 1.442695, %v1179_v30 }
 0x358   :  { %v1308_v7 = vpop.xlane.xlu0 %1307 }
 0x359   :  { %1924 = vrcp.f32 %v1308_v7 }
 0x35a   :  { %1926 = vpow2.f32 %v524_v14 }
 0x35b   :  { %1928 = vpow2.f32 %v656_v15 }
 0x35c   :  { %1930 = vpow2.f32 %v787_v18 }
 0x366   :  { %v1925_v26 = vpop.eup %1924 }
 0x367   :  { %v1310_v31 = vmul.f32 %v1925_v26, %v1909_v59  ;;  %v1927_v57 = vpop.eup %1926 }
 0x368   :  { %v1929_v34 = vpop.eup %1928  ;;  %v531_v39 = vmul.f32 %v1927_v57, %v2297_v27 }
 0x369   :  { %v1311_v33 = vmul.f32 1.442695, %v1310_v31  ;;  %v1931_v36 = vpop.eup %1930  ;;  %v662_v20 = vmul.f32 %v1929_v34, %v2299_v28 }
 0x36a   :  { %v793_v38 = vmul.f32 %v1931_v36, %v2301_v29 }
 0x36b   :  { %v663_v35 = vadd.f32 %v662_v20, %v531_v39 }
 0x36d   :  { %v794_v43 = vadd.f32 %v793_v38, %v663_v35 }
 0x36f   :  { %v1439_v24 = vpop.xlane.xlu1 %1438 }
 0x370   :  { %1932 = vrcp.f32 %v1439_v24 }
 0x371   :  { %1934 = vpow2.f32 %v918_v25 }
 0x372   :  { %1936 = vpow2.f32 %v1049_v55 }
 0x373   :  { %1938 = vpow2.f32 %v1180_v32  ;;  %v1315_v49 = vpop.permute.xlu1 %1314 }
 0x374   :  { %1940 = vpow2.f32 %v1311_v33 }
 0x377   :  { %v1446_v53 = vpop.permute.xlu1 %1445 }
 0x37d   :  { %v1933_v17 = vpop.eup %1932 }
 0x37e   :  { %v1441_v37 = vmul.f32 %v1933_v17, %v1911_v62  ;;  %v1935_v41 = vpop.eup %1934 }
 0x37f   :  { %v1937_v42 = vpop.eup %1936  ;;  %v924_v44 = vmul.f32 %v1935_v41, %v922_v1 }
 0x380   :  { %v1442_v40 = vmul.f32 1.442695, %v1441_v37  ;;  %v1055_v45 = vmul.f32 %v1937_v42, %v1053_v63  ;;  %v1939_v46 = vpop.eup %1938 }
 0x381   :  { %v925_v47 = vadd.f32 %v924_v44, %v794_v43  ;;  %v1941_v48 = vpop.eup %1940  ;;  %v1186_v52 = vmul.f32 %v1939_v46, %v1184_v19 }
 0x382   :  { %1942 = vpow2.f32 %v1442_v40  ;;  %v1317_v28 = vmul.f32 %v1941_v48, %v1315_v49 }
 0x383   :  { %v1056_v50 = vadd.f32 %v1055_v45, %v925_v47 }
 0x385   :  { %v1187_v54 = vadd.f32 %v1186_v52, %v1056_v50 }
 0x387   :  { %v1318_v56 = vadd.f32 %v1317_v28, %v1187_v54 }
 0x38f   :  { %v1943_v29 = vpop.eup %1942 }
 0x390   :  { %v1448_v27 = vmul.f32 %v1943_v29, %v1446_v53 }
 0x392   :  { %v1449_v58 = vadd.f32 %v1448_v27, %v1318_v56 }
 0x394   :  { %vm1450_vm2 = vcmp.eq.f32.partialorder %v1449_v58, 0.0 }
 0x395   :  { %v1451_v59 = vsel %vm1450_vm2, 2.220446e-16, %v1449_v58 }
 0x396   :  { %1944 = vlog2.f32 %v1451_v59 }
 0x3a3   :  { %v1945_v60 = vpop.eup %1944 }
 0x3a4   :  { %v1453_v61 = vmul.f32 0.6931472, %v1945_v60 }
 0x3a6   :  { %1454 = vst [vmem:[#allocation11] sm:$0xff] %v1453_v61 }
 0x3a7   :  { %2057 = shalt.err (!%p2054_p1)
}
 0x3a8   :  { %1464 = dma.vmem_to_hbm [thread:$0]  %s1462_s12, 128, %s2328_s6, [#allocation4]  }
 0x3a9   :  { %2072 = dma.done.wait [#allocation4], 128  }
 0x3aa   :  { %2073 = vsyncadd [#allocation4], 4294967168 }
 0x3ab   :  { %1468 = vsyncpa [#allocation3], 1 }
 0x3ac   :  { %1469 = vsyncpa [#allocation6], 1 }
 0x3ad   :  { %1470 = vsyncpa [#allocation9], 1 }
 0x3ae   :  { %1471 = vsyncpa [#allocation4], 1 }

</bundles_post_ra>
